<compile_context>
chip_gen: v7x
topology: tpu7x:2x2x1
jax: 0.10.0
libtpu: 0.0.40
codegen_flags: <defaults>
</compile_context>

<pallas_src>
import jax
import jax.numpy as jnp
from jax import lax
from jax.experimental import pallas as pl
from jax.experimental.pallas import tpu as pltpu  # noqa: F401  (kept for TPU params if needed)

# Problem sizes (small, consistent with the module: d_model divisible by n_heads).
B = 2            # batch
S = 8            # sequence length
D_MODEL = 32     # d_model
N_HEADS = 4
N_TS = 3         # n_timescales
HEAD_DIM = D_MODEL // N_HEADS
TH = N_TS * N_HEADS          # batched (timescale, head) axis = 12
BS = B * S                   # batch folded into sequence = 16
SCALE = float(HEAD_DIM) ** 0.5
LN_EPS = 1e-5


# ----------------------------------------------------------------------------- #
# Fused kernel: projections + all-timescale attention + decoder MLP, one shot.
# ----------------------------------------------------------------------------- #
def _fused_kernel(qkv_ref,    # [3, BS, D]           q / k / v stacked
                  wqkv_ref,   # [3, D, TH*hd]        wide projection weights
                  bqkv_ref,   # [3, 1, TH*hd]        wide projection biases
                  dm_ref,     # [2, TH, BS, BS]      [0]=discount*1/scale, [1]=additive -1e9 cross-batch mask
                  w1_ref,     # [TH, hd, 2D]         decoder Linear-1 weight, split per (t, h)
                  w2_ref,     # [2D, D]              decoder Linear-2 weight
                  dvec_ref,   # [4, 2D]              rows: b1, ln_gamma, ln_beta, b2 (b2 in first D lanes)
                  out_ref,    # [BS, D]
                  attn_ref):  # [TH, BS, BS]
    # --- Wide Q/K/V projections: three [16,32] x [32,96] MXU matmuls ---------
    Qw = jnp.dot(qkv_ref[0], wqkv_ref[0], preferred_element_type=jnp.float32) + bqkv_ref[0]
    Kw = jnp.dot(qkv_ref[1], wqkv_ref[1], preferred_element_type=jnp.float32) + bqkv_ref[1]
    Vw = jnp.dot(qkv_ref[2], wqkv_ref[2], preferred_element_type=jnp.float32) + bqkv_ref[2]

    # Split per (timescale, head) along the lane axis onto a leading batch dim.
    def split_heads(x):                                   # [BS, TH*hd] -> [TH, BS, hd]
        return jnp.stack([x[:, n * HEAD_DIM:(n + 1) * HEAD_DIM] for n in range(TH)], axis=0)

    Qh = split_heads(Qw)
    Kh = split_heads(Kw)
    Vh = split_heads(Vw)

    # --- Scores over the batch-flattened sequence ---------------------------
    # energy[n, q, k]; cross-batch entries are removed by the additive mask.
    energy = jnp.einsum('nqe,nke->nqk', Qh, Kh, preferred_element_type=jnp.float32)
    energy = energy * dm_ref[0] + dm_ref[1]       # discount (1/scale folded) + (-1e9 cross-batch)
    # TODO(synk): optional attention-mask argument (mask == 0 -> -1e10) not implemented.

    # Softmax with the divide expressed as a reciprocal-multiply.
    m = jnp.max(energy, axis=-1, keepdims=True)
    p = jnp.exp(energy - m)
    denom = jnp.sum(p, axis=-1, keepdims=True)
    attn = p * pl.reciprocal(denom, approx=False)  # dropout == identity (eval mode)
    attn_ref[...] = attn

    ctx = jnp.einsum('nqk,nke->nqe', attn, Vh, preferred_element_type=jnp.float32)  # [TH, BS, hd]

    # --- Decoder: Linear(3D->2D) -> LayerNorm -> ReLU -> Linear(2D->D) ------
    # First Linear contracts the (t, h) axis with accumulating MXU matmuls
    # (replaces the 12-way lane concatenation of the previous version).
    dvec = dvec_ref[...]                                   # [4, 2D]
    h1 = jnp.zeros((BS, 2 * D_MODEL), jnp.float32)
    for n in range(TH):                                    # statically unrolled
        h1 = h1 + jnp.dot(ctx[n], w1_ref[n], preferred_element_type=jnp.float32)
    h1 = h1 + dvec[0:1]                                    # + b1

    mean = jnp.mean(h1, axis=-1, keepdims=True)
    var = jnp.mean(jnp.square(h1 - mean), axis=-1, keepdims=True)
    hn = (h1 - mean) * lax.rsqrt(var + LN_EPS)
    hn = hn * dvec[1:2] + dvec[2:3]                        # LayerNorm affine
    hr = jnp.maximum(hn, 0.0)

    out = jnp.dot(hr, w2_ref[...], preferred_element_type=jnp.float32) + dvec[3:4, :D_MODEL]
    out_ref[...] = out


# ----------------------------------------------------------------------------- #
# Wrapper: pack operands, call the kernel once, unpack outputs.
# ----------------------------------------------------------------------------- #
def _wide(w):
    # [T, D_in, D_out] -> [D_in, T*D_out]; column c = t*D + (h*hd + d), i.e. the
    # exact (t, h, d) ordering produced by torch's .view(B,-1,H,hd) + cat.
    return jnp.transpose(w, (1, 0, 2)).reshape(D_MODEL, N_TS * D_MODEL)


@jax.jit
def multi_timescale_attention(query, key, value, params):
    # Inputs: fold batch into the row axis.
    qkv = jnp.stack([query.reshape(BS, D_MODEL),
                     key.reshape(BS, D_MODEL),
                     value.reshape(BS, D_MODEL)], axis=0)              # [3, BS, D]

    wqkv = jnp.stack([_wide(params["wq"]), _wide(params["wk"]), _wide(params["wv"])], axis=0)
    bqkv = jnp.stack([params["bq"].reshape(1, N_TS * D_MODEL),
                      params["bk"].reshape(1, N_TS * D_MODEL),
                      params["bv"].reshape(1, N_TS * D_MODEL)], axis=0)  # [3, 1, 96]

    # Temporal discount (1/sqrt(head_dim) folded) embedded block-diagonally into
    # the batch-flattened [BS, BS] key axis, plus an additive cross-batch mask.
    pos = jnp.arange(S)
    pdiff = jnp.abs(pos[:, None] - pos[None, :]).astype(jnp.float32)     # [S, S]
    disc_t = (params["gammas"][:, None, None] ** pdiff[None]) / SCALE    # [T, S, S]
    disc_th = jnp.broadcast_to(disc_t[:, None], (N_TS, N_HEADS, S, S)).reshape(TH, S, S)
    blockmask = jnp.kron(jnp.eye(B, dtype=jnp.float32), jnp.ones((S, S), jnp.float32))  # [BS, BS]
    disc_full = jnp.tile(disc_th, (1, B, B)) * blockmask[None]           # [TH, BS, BS]
    addmask = jnp.broadcast_to((blockmask - 1.0)[None] * 1e9, (TH, BS, BS))
    dm = jnp.stack([disc_full, addmask], axis=0)                          # [2, TH, BS, BS]

    # Decoder weights: w1 split per (t, h); small vectors packed into one slab.
    w1_r = params["w1"].reshape(TH, HEAD_DIM, 2 * D_MODEL)                # [12, 8, 64]
    b2_pad = jnp.pad(params["b2"], ((0, 0), (0, 2 * D_MODEL - D_MODEL)))
    dvec = jnp.concatenate([params["b1"], params["ln_g"], params["ln_b"], b2_pad], axis=0)  # [4, 64]

    out2d, attn_full = pl.pallas_call(
        _fused_kernel,
        out_shape=(
            jax.ShapeDtypeStruct((BS, D_MODEL), jnp.float32),
            jax.ShapeDtypeStruct((TH, BS, BS), jnp.float32),
        ),
    )(qkv, wqkv, bqkv, dm, w1_r, params["w2"], dvec)

    out = out2d.reshape(B, S, D_MODEL)
    # Extract per-batch diagonal blocks of the attention map (cheap XLA slices).
    a6 = attn_full.reshape(N_TS, N_HEADS, B, S, B, S)
    attn_w = jnp.stack([a6[:, :, b, :, b, :] for b in range(B)], axis=0)   # [B, T, H, S, S]
    return out, attn_w


# ----------------------------------------------------------------------------- #
# Pure-JAX reference (mirrors the PyTorch forward with dropout disabled)
# ----------------------------------------------------------------------------- #
def ref_forward(query, key, value, params):
    pos = jnp.arange(S)
    pos_diff = jnp.abs(pos[:, None] - pos[None, :]).astype(jnp.float32)
    outs, attns = [], []
    for t in range(N_TS):
        Q = query @ params["wq"][t] + params["bq"][t, 0]
        K = key @ params["wk"][t] + params["bk"][t, 0]
        V = value @ params["wv"][t] + params["bv"][t, 0]
        Qh = Q.reshape(B, S, N_HEADS, HEAD_DIM).transpose(0, 2, 1, 3)
        Kh = K.reshape(B, S, N_HEADS, HEAD_DIM).transpose(0, 2, 1, 3)
        Vh = V.reshape(B, S, N_HEADS, HEAD_DIM).transpose(0, 2, 1, 3)
        energy = jnp.einsum("bhqd,bhkd->bhqk", Qh, Kh) / SCALE
        energy = energy * (params["gammas"][t] ** pos_diff)
        attn = jax.nn.softmax(energy, axis=-1)
        attns.append(attn)
        x = jnp.einsum("bhqk,bhkd->bhqd", attn, Vh)
        outs.append(x.transpose(0, 2, 1, 3).reshape(B, S, D_MODEL))
    multi = jnp.concatenate(outs, axis=-1)
    h = multi @ params["w1"] + params["b1"][0]
    mean = h.mean(-1, keepdims=True)
    var = ((h - mean) ** 2).mean(-1, keepdims=True)
    hn = (h - mean) / jnp.sqrt(var + LN_EPS)
    hn = hn * params["ln_g"][0] + params["ln_b"][0]
    out = jnp.maximum(hn, 0.0) @ params["w2"] + params["b2"][0]
    return out, jnp.stack(attns, axis=1)


def init_params(key):
    def u(k, shape, fan_in):
        bound = 1.0 / (fan_in ** 0.5)
        return jax.random.uniform(k, shape, jnp.float32, -bound, bound)

    ks = jax.random.split(key, 12)
    d, t = D_MODEL, N_TS
    return {
        "gammas": jnp.array([0.6, 0.9, 0.99], dtype=jnp.float32)[:t],
        "wq": u(ks[0], (t, d, d), d), "bq": u(ks[1], (t, 1, d), d),
        "wk": u(ks[2], (t, d, d), d), "bk": u(ks[3], (t, 1, d), d),
        "wv": u(ks[4], (t, d, d), d), "bv": u(ks[5], (t, 1, d), d),
        "w1": u(ks[6], (t * d, 2 * d), t * d), "b1": u(ks[7], (1, 2 * d), t * d),
        "ln_g": jnp.ones((1, 2 * d), jnp.float32),
        "ln_b": jnp.zeros((1, 2 * d), jnp.float32),
        "w2": u(ks[8], (2 * d, d), 2 * d), "b2": u(ks[9], (1, d), 2 * d),
    }


if __name__ == "__main__":
    root = jax.random.PRNGKey(0)
    kq, kk, kv, kp = jax.random.split(root, 4)
    query = jax.random.normal(kq, (B, S, D_MODEL), jnp.float32)
    key = jax.random.normal(kk, (B, S, D_MODEL), jnp.float32)
    value = jax.random.normal(kv, (B, S, D_MODEL), jnp.float32)
    params = init_params(kp)

    out, attn = multi_timescale_attention(query, key, value, params)
    out = jax.block_until_ready(out)
    attn = jax.block_until_ready(attn)

    out_ref, attn_ref = ref_forward(query, key, value, params)
    assert out.shape == (B, S, D_MODEL)
    assert attn.shape == (B, N_TS, N_HEADS, S, S)
    assert jnp.allclose(out, out_ref, atol=1e-4, rtol=1e-4), "output mismatch"
    assert jnp.allclose(attn, attn_ref, atol=1e-4, rtol=1e-4), "attention mismatch"

    print("KERNEL_OK")
</pallas_src>

<mosaic_0001>
module attributes {stable_mosaic.version = 11 : i64} {
  func.func @_fused_kernel(%arg0: memref<3x16x32xf32, #tpu.memory_space<vmem>>, %arg1: memref<3x32x96xf32, #tpu.memory_space<vmem>>, %arg2: memref<3x1x96xf32, #tpu.memory_space<vmem>>, %arg3: memref<2x12x16x16xf32, #tpu.memory_space<vmem>>, %arg4: memref<12x8x64xf32, #tpu.memory_space<vmem>>, %arg5: memref<64x32xf32, #tpu.memory_space<vmem>>, %arg6: memref<4x64xf32, #tpu.memory_space<vmem>>, %arg7: memref<16x32xf32, #tpu.memory_space<vmem>>, %arg8: memref<12x16x16xf32, #tpu.memory_space<vmem>>) attributes {dimension_semantics = [], scalar_prefetch = 0 : i64, scratch_operands = 0 : i64, tpu.core_type = #tpu.core_type<tc>} {
    %c0 = arith.constant 0 : index
    %c0_0 = arith.constant 0 : index
    %c0_1 = arith.constant 0 : index
    %0 = vector.load %arg0[%c0, %c0_0, %c0_1] : memref<3x16x32xf32, #tpu.memory_space<vmem>>, vector<1x16x32xf32>
    %1 = vector.shape_cast %0 : vector<1x16x32xf32> to vector<16x32xf32>
    %c0_2 = arith.constant 0 : index
    %c0_3 = arith.constant 0 : index
    %c0_4 = arith.constant 0 : index
    %2 = vector.load %arg1[%c0_2, %c0_3, %c0_4] : memref<3x32x96xf32, #tpu.memory_space<vmem>>, vector<1x32x96xf32>
    %3 = vector.shape_cast %2 : vector<1x32x96xf32> to vector<32x96xf32>
    %cst = arith.constant dense<0.000000e+00> : vector<16x96xf32>
    %4 = tpu.matmul %1, %3, %cst {dimension_numbers = #tpu.dot_dimension_numbers<[1], [0], [0], [1], [0, 0, 1, 1], [], []>} : vector<16x32xf32>, vector<32x96xf32>, vector<16x96xf32> -> vector<16x96xf32>
    %c0_5 = arith.constant 0 : index
    %c0_6 = arith.constant 0 : index
    %c0_7 = arith.constant 0 : index
    %5 = vector.load %arg2[%c0_5, %c0_6, %c0_7] : memref<3x1x96xf32, #tpu.memory_space<vmem>>, vector<1x1x96xf32>
    %6 = vector.shape_cast %5 : vector<1x1x96xf32> to vector<1x96xf32>
    %7 = vector.broadcast %6 : vector<1x96xf32> to vector<16x96xf32>
    %8 = arith.addf %4, %7 : vector<16x96xf32>
    %c1 = arith.constant 1 : index
    %c0_8 = arith.constant 0 : index
    %c0_9 = arith.constant 0 : index
    %9 = vector.load %arg0[%c1, %c0_8, %c0_9] : memref<3x16x32xf32, #tpu.memory_space<vmem>>, vector<1x16x32xf32>
    %10 = vector.shape_cast %9 : vector<1x16x32xf32> to vector<16x32xf32>
    %c1_10 = arith.constant 1 : index
    %c0_11 = arith.constant 0 : index
    %c0_12 = arith.constant 0 : index
    %11 = vector.load %arg1[%c1_10, %c0_11, %c0_12] : memref<3x32x96xf32, #tpu.memory_space<vmem>>, vector<1x32x96xf32>
    %12 = vector.shape_cast %11 : vector<1x32x96xf32> to vector<32x96xf32>
    %cst_13 = arith.constant dense<0.000000e+00> : vector<16x96xf32>
    %13 = tpu.matmul %10, %12, %cst_13 {dimension_numbers = #tpu.dot_dimension_numbers<[1], [0], [0], [1], [0, 0, 1, 1], [], []>} : vector<16x32xf32>, vector<32x96xf32>, vector<16x96xf32> -> vector<16x96xf32>
    %c1_14 = arith.constant 1 : index
    %c0_15 = arith.constant 0 : index
    %c0_16 = arith.constant 0 : index
    %14 = vector.load %arg2[%c1_14, %c0_15, %c0_16] : memref<3x1x96xf32, #tpu.memory_space<vmem>>, vector<1x1x96xf32>
    %15 = vector.shape_cast %14 : vector<1x1x96xf32> to vector<1x96xf32>
    %16 = vector.broadcast %15 : vector<1x96xf32> to vector<16x96xf32>
    %17 = arith.addf %13, %16 : vector<16x96xf32>
    %c2 = arith.constant 2 : index
    %c0_17 = arith.constant 0 : index
    %c0_18 = arith.constant 0 : index
    %18 = vector.load %arg0[%c2, %c0_17, %c0_18] : memref<3x16x32xf32, #tpu.memory_space<vmem>>, vector<1x16x32xf32>
    %19 = vector.shape_cast %18 : vector<1x16x32xf32> to vector<16x32xf32>
    %c2_19 = arith.constant 2 : index
    %c0_20 = arith.constant 0 : index
    %c0_21 = arith.constant 0 : index
    %20 = vector.load %arg1[%c2_19, %c0_20, %c0_21] : memref<3x32x96xf32, #tpu.memory_space<vmem>>, vector<1x32x96xf32>
    %21 = vector.shape_cast %20 : vector<1x32x96xf32> to vector<32x96xf32>
    %cst_22 = arith.constant dense<0.000000e+00> : vector<16x96xf32>
    %22 = tpu.matmul %19, %21, %cst_22 {dimension_numbers = #tpu.dot_dimension_numbers<[1], [0], [0], [1], [0, 0, 1, 1], [], []>} : vector<16x32xf32>, vector<32x96xf32>, vector<16x96xf32> -> vector<16x96xf32>
    %c2_23 = arith.constant 2 : index
    %c0_24 = arith.constant 0 : index
    %c0_25 = arith.constant 0 : index
    %23 = vector.load %arg2[%c2_23, %c0_24, %c0_25] : memref<3x1x96xf32, #tpu.memory_space<vmem>>, vector<1x1x96xf32>
    %24 = vector.shape_cast %23 : vector<1x1x96xf32> to vector<1x96xf32>
    %25 = vector.broadcast %24 : vector<1x96xf32> to vector<16x96xf32>
    %26 = arith.addf %22, %25 : vector<16x96xf32>
    %27 = vector.extract_strided_slice %8 {offsets = [0, 0], sizes = [16, 8], strides = [1, 1]} : vector<16x96xf32> to vector<16x8xf32>
    %28 = vector.extract_strided_slice %8 {offsets = [0, 8], sizes = [16, 8], strides = [1, 1]} : vector<16x96xf32> to vector<16x8xf32>
    %29 = vector.extract_strided_slice %8 {offsets = [0, 16], sizes = [16, 8], strides = [1, 1]} : vector<16x96xf32> to vector<16x8xf32>
    %30 = vector.extract_strided_slice %8 {offsets = [0, 24], sizes = [16, 8], strides = [1, 1]} : vector<16x96xf32> to vector<16x8xf32>
    %31 = vector.extract_strided_slice %8 {offsets = [0, 32], sizes = [16, 8], strides = [1, 1]} : vector<16x96xf32> to vector<16x8xf32>
    %32 = vector.extract_strided_slice %8 {offsets = [0, 40], sizes = [16, 8], strides = [1, 1]} : vector<16x96xf32> to vector<16x8xf32>
    %33 = vector.extract_strided_slice %8 {offsets = [0, 48], sizes = [16, 8], strides = [1, 1]} : vector<16x96xf32> to vector<16x8xf32>
    %34 = vector.extract_strided_slice %8 {offsets = [0, 56], sizes = [16, 8], strides = [1, 1]} : vector<16x96xf32> to vector<16x8xf32>
    %35 = vector.extract_strided_slice %8 {offsets = [0, 64], sizes = [16, 8], strides = [1, 1]} : vector<16x96xf32> to vector<16x8xf32>
    %36 = vector.extract_strided_slice %8 {offsets = [0, 72], sizes = [16, 8], strides = [1, 1]} : vector<16x96xf32> to vector<16x8xf32>
    %37 = vector.extract_strided_slice %8 {offsets = [0, 80], sizes = [16, 8], strides = [1, 1]} : vector<16x96xf32> to vector<16x8xf32>
    %38 = vector.extract_strided_slice %8 {offsets = [0, 88], sizes = [16, 8], strides = [1, 1]} : vector<16x96xf32> to vector<16x8xf32>
    %39 = vector.shape_cast %27 : vector<16x8xf32> to vector<1x16x8xf32>
    %40 = vector.shape_cast %28 : vector<16x8xf32> to vector<1x16x8xf32>
    %41 = vector.shape_cast %29 : vector<16x8xf32> to vector<1x16x8xf32>
    %42 = vector.shape_cast %30 : vector<16x8xf32> to vector<1x16x8xf32>
    %43 = vector.shape_cast %31 : vector<16x8xf32> to vector<1x16x8xf32>
    %44 = vector.shape_cast %32 : vector<16x8xf32> to vector<1x16x8xf32>
    %45 = vector.shape_cast %33 : vector<16x8xf32> to vector<1x16x8xf32>
    %46 = vector.shape_cast %34 : vector<16x8xf32> to vector<1x16x8xf32>
    %47 = vector.shape_cast %35 : vector<16x8xf32> to vector<1x16x8xf32>
    %48 = vector.shape_cast %36 : vector<16x8xf32> to vector<1x16x8xf32>
    %49 = vector.shape_cast %37 : vector<16x8xf32> to vector<1x16x8xf32>
    %50 = vector.shape_cast %38 : vector<16x8xf32> to vector<1x16x8xf32>
    %51 = tpu.concatenate %39, %40, %41, %42, %43, %44, %45, %46, %47, %48, %49, %50 in 0 : vector<1x16x8xf32>, vector<1x16x8xf32>, vector<1x16x8xf32>, vector<1x16x8xf32>, vector<1x16x8xf32>, vector<1x16x8xf32>, vector<1x16x8xf32>, vector<1x16x8xf32>, vector<1x16x8xf32>, vector<1x16x8xf32>, vector<1x16x8xf32>, vector<1x16x8xf32> -> vector<12x16x8xf32>
    %52 = vector.extract_strided_slice %17 {offsets = [0, 0], sizes = [16, 8], strides = [1, 1]} : vector<16x96xf32> to vector<16x8xf32>
    %53 = vector.extract_strided_slice %17 {offsets = [0, 8], sizes = [16, 8], strides = [1, 1]} : vector<16x96xf32> to vector<16x8xf32>
    %54 = vector.extract_strided_slice %17 {offsets = [0, 16], sizes = [16, 8], strides = [1, 1]} : vector<16x96xf32> to vector<16x8xf32>
    %55 = vector.extract_strided_slice %17 {offsets = [0, 24], sizes = [16, 8], strides = [1, 1]} : vector<16x96xf32> to vector<16x8xf32>
    %56 = vector.extract_strided_slice %17 {offsets = [0, 32], sizes = [16, 8], strides = [1, 1]} : vector<16x96xf32> to vector<16x8xf32>
    %57 = vector.extract_strided_slice %17 {offsets = [0, 40], sizes = [16, 8], strides = [1, 1]} : vector<16x96xf32> to vector<16x8xf32>
    %58 = vector.extract_strided_slice %17 {offsets = [0, 48], sizes = [16, 8], strides = [1, 1]} : vector<16x96xf32> to vector<16x8xf32>
    %59 = vector.extract_strided_slice %17 {offsets = [0, 56], sizes = [16, 8], strides = [1, 1]} : vector<16x96xf32> to vector<16x8xf32>
    %60 = vector.extract_strided_slice %17 {offsets = [0, 64], sizes = [16, 8], strides = [1, 1]} : vector<16x96xf32> to vector<16x8xf32>
    %61 = vector.extract_strided_slice %17 {offsets = [0, 72], sizes = [16, 8], strides = [1, 1]} : vector<16x96xf32> to vector<16x8xf32>
    %62 = vector.extract_strided_slice %17 {offsets = [0, 80], sizes = [16, 8], strides = [1, 1]} : vector<16x96xf32> to vector<16x8xf32>
    %63 = vector.extract_strided_slice %17 {offsets = [0, 88], sizes = [16, 8], strides = [1, 1]} : vector<16x96xf32> to vector<16x8xf32>
    %64 = vector.shape_cast %52 : vector<16x8xf32> to vector<1x16x8xf32>
    %65 = vector.shape_cast %53 : vector<16x8xf32> to vector<1x16x8xf32>
    %66 = vector.shape_cast %54 : vector<16x8xf32> to vector<1x16x8xf32>
    %67 = vector.shape_cast %55 : vector<16x8xf32> to vector<1x16x8xf32>
    %68 = vector.shape_cast %56 : vector<16x8xf32> to vector<1x16x8xf32>
    %69 = vector.shape_cast %57 : vector<16x8xf32> to vector<1x16x8xf32>
    %70 = vector.shape_cast %58 : vector<16x8xf32> to vector<1x16x8xf32>
    %71 = vector.shape_cast %59 : vector<16x8xf32> to vector<1x16x8xf32>
    %72 = vector.shape_cast %60 : vector<16x8xf32> to vector<1x16x8xf32>
    %73 = vector.shape_cast %61 : vector<16x8xf32> to vector<1x16x8xf32>
    %74 = vector.shape_cast %62 : vector<16x8xf32> to vector<1x16x8xf32>
    %75 = vector.shape_cast %63 : vector<16x8xf32> to vector<1x16x8xf32>
    %76 = tpu.concatenate %64, %65, %66, %67, %68, %69, %70, %71, %72, %73, %74, %75 in 0 : vector<1x16x8xf32>, vector<1x16x8xf32>, vector<1x16x8xf32>, vector<1x16x8xf32>, vector<1x16x8xf32>, vector<1x16x8xf32>, vector<1x16x8xf32>, vector<1x16x8xf32>, vector<1x16x8xf32>, vector<1x16x8xf32>, vector<1x16x8xf32>, vector<1x16x8xf32> -> vector<12x16x8xf32>
    %77 = vector.extract_strided_slice %26 {offsets = [0, 0], sizes = [16, 8], strides = [1, 1]} : vector<16x96xf32> to vector<16x8xf32>
    %78 = vector.extract_strided_slice %26 {offsets = [0, 8], sizes = [16, 8], strides = [1, 1]} : vector<16x96xf32> to vector<16x8xf32>
    %79 = vector.extract_strided_slice %26 {offsets = [0, 16], sizes = [16, 8], strides = [1, 1]} : vector<16x96xf32> to vector<16x8xf32>
    %80 = vector.extract_strided_slice %26 {offsets = [0, 24], sizes = [16, 8], strides = [1, 1]} : vector<16x96xf32> to vector<16x8xf32>
    %81 = vector.extract_strided_slice %26 {offsets = [0, 32], sizes = [16, 8], strides = [1, 1]} : vector<16x96xf32> to vector<16x8xf32>
    %82 = vector.extract_strided_slice %26 {offsets = [0, 40], sizes = [16, 8], strides = [1, 1]} : vector<16x96xf32> to vector<16x8xf32>
    %83 = vector.extract_strided_slice %26 {offsets = [0, 48], sizes = [16, 8], strides = [1, 1]} : vector<16x96xf32> to vector<16x8xf32>
    %84 = vector.extract_strided_slice %26 {offsets = [0, 56], sizes = [16, 8], strides = [1, 1]} : vector<16x96xf32> to vector<16x8xf32>
    %85 = vector.extract_strided_slice %26 {offsets = [0, 64], sizes = [16, 8], strides = [1, 1]} : vector<16x96xf32> to vector<16x8xf32>
    %86 = vector.extract_strided_slice %26 {offsets = [0, 72], sizes = [16, 8], strides = [1, 1]} : vector<16x96xf32> to vector<16x8xf32>
    %87 = vector.extract_strided_slice %26 {offsets = [0, 80], sizes = [16, 8], strides = [1, 1]} : vector<16x96xf32> to vector<16x8xf32>
    %88 = vector.extract_strided_slice %26 {offsets = [0, 88], sizes = [16, 8], strides = [1, 1]} : vector<16x96xf32> to vector<16x8xf32>
    %89 = vector.shape_cast %77 : vector<16x8xf32> to vector<1x16x8xf32>
    %90 = vector.shape_cast %78 : vector<16x8xf32> to vector<1x16x8xf32>
    %91 = vector.shape_cast %79 : vector<16x8xf32> to vector<1x16x8xf32>
    %92 = vector.shape_cast %80 : vector<16x8xf32> to vector<1x16x8xf32>
    %93 = vector.shape_cast %81 : vector<16x8xf32> to vector<1x16x8xf32>
    %94 = vector.shape_cast %82 : vector<16x8xf32> to vector<1x16x8xf32>
    %95 = vector.shape_cast %83 : vector<16x8xf32> to vector<1x16x8xf32>
    %96 = vector.shape_cast %84 : vector<16x8xf32> to vector<1x16x8xf32>
    %97 = vector.shape_cast %85 : vector<16x8xf32> to vector<1x16x8xf32>
    %98 = vector.shape_cast %86 : vector<16x8xf32> to vector<1x16x8xf32>
    %99 = vector.shape_cast %87 : vector<16x8xf32> to vector<1x16x8xf32>
    %100 = vector.shape_cast %88 : vector<16x8xf32> to vector<1x16x8xf32>
    %101 = tpu.concatenate %89, %90, %91, %92, %93, %94, %95, %96, %97, %98, %99, %100 in 0 : vector<1x16x8xf32>, vector<1x16x8xf32>, vector<1x16x8xf32>, vector<1x16x8xf32>, vector<1x16x8xf32>, vector<1x16x8xf32>, vector<1x16x8xf32>, vector<1x16x8xf32>, vector<1x16x8xf32>, vector<1x16x8xf32>, vector<1x16x8xf32>, vector<1x16x8xf32> -> vector<12x16x8xf32>
    "tpu.trace_start"() <{level = 10 : i32, message = "nqe,nke->nqk"}> : () -> ()
    %cst_26 = arith.constant dense<0.000000e+00> : vector<12x16x16xf32>
    %102 = tpu.matmul %51, %76, %cst_26 {dimension_numbers = #tpu.dot_dimension_numbers<[2], [2], [1], [1], [0, 0, 0, 1, 1, 1], [0], [0]>} : vector<12x16x8xf32>, vector<12x16x8xf32>, vector<12x16x16xf32> -> vector<12x16x16xf32>
    "tpu.trace_stop"() : () -> ()
    %c0_27 = arith.constant 0 : index
    %c0_28 = arith.constant 0 : index
    %c0_29 = arith.constant 0 : index
    %c0_30 = arith.constant 0 : index
    %103 = vector.load %arg3[%c0_27, %c0_28, %c0_29, %c0_30] : memref<2x12x16x16xf32, #tpu.memory_space<vmem>>, vector<1x12x16x16xf32>
    %104 = vector.shape_cast %103 : vector<1x12x16x16xf32> to vector<12x16x16xf32>
    %105 = arith.mulf %102, %104 : vector<12x16x16xf32>
    %c1_31 = arith.constant 1 : index
    %c0_32 = arith.constant 0 : index
    %c0_33 = arith.constant 0 : index
    %c0_34 = arith.constant 0 : index
    %106 = vector.load %arg3[%c1_31, %c0_32, %c0_33, %c0_34] : memref<2x12x16x16xf32, #tpu.memory_space<vmem>>, vector<1x12x16x16xf32>
    %107 = vector.shape_cast %106 : vector<1x12x16x16xf32> to vector<12x16x16xf32>
    %108 = arith.addf %105, %107 : vector<12x16x16xf32>
    %cst_35 = arith.constant dense<0xFF800000> : vector<12x16xf32>
    %109 = vector.multi_reduction <maximumf>, %108, %cst_35 [2] : vector<12x16x16xf32> to vector<12x16xf32>
    %110 = vector.shape_cast %109 : vector<12x16xf32> to vector<12x16x1xf32>
    %111 = vector.broadcast %110 : vector<12x16x1xf32> to vector<12x16x16xf32>
    %112 = arith.subf %108, %111 : vector<12x16x16xf32>
    %113 = math.exp %112 : vector<12x16x16xf32>
    %cst_36 = arith.constant dense<0.000000e+00> : vector<12x16xf32>
    %114 = vector.multi_reduction <add>, %113, %cst_36 [2] : vector<12x16x16xf32> to vector<12x16xf32>
    %115 = vector.shape_cast %114 : vector<12x16xf32> to vector<12x16x1xf32>
    %116 = tpu.reciprocal %115 : vector<12x16x1xf32> -> vector<12x16x1xf32>
    %117 = vector.broadcast %116 : vector<12x16x1xf32> to vector<12x16x16xf32>
    %118 = arith.mulf %113, %117 : vector<12x16x16xf32>
    %c0_37 = arith.constant 0 : index
    %c0_38 = arith.constant 0 : index
    %c0_39 = arith.constant 0 : index
    %119 = vector.load %arg8[%c0_37, %c0_38, %c0_39] : memref<12x16x16xf32, #tpu.memory_space<vmem>>, vector<12x16x16xf32>
    tpu.vector_store %arg8[%c0_37, %c0_38, %c0_39], %118 {strides = array<i32>} : memref<12x16x16xf32, #tpu.memory_space<vmem>>, vector<12x16x16xf32>,
    "tpu.trace_start"() <{level = 10 : i32, message = "nqk,nke->nqe"}> : () -> ()
    %cst_40 = arith.constant dense<0.000000e+00> : vector<12x16x8xf32>
    %120 = tpu.matmul %118, %101, %cst_40 {dimension_numbers = #tpu.dot_dimension_numbers<[2], [1], [1], [2], [0, 0, 0, 1, 1, 2], [0], [0]>} : vector<12x16x16xf32>, vector<12x16x8xf32>, vector<12x16x8xf32> -> vector<12x16x8xf32>
    "tpu.trace_stop"() : () -> ()
    %c0_41 = arith.constant 0 : index
    %c0_42 = arith.constant 0 : index
    %121 = vector.load %arg6[%c0_41, %c0_42] : memref<4x64xf32, #tpu.memory_space<vmem>>, vector<4x64xf32>
    %cst_43 = arith.constant 0.000000e+00 : f32
    %122 = vector.broadcast %cst_43 : f32 to vector<16x64xf32>
    %123 = vector.extract_strided_slice %120 {offsets = [0, 0, 0], sizes = [1, 16, 8], strides = [1, 1, 1]} : vector<12x16x8xf32> to vector<1x16x8xf32>
    %124 = vector.shape_cast %123 : vector<1x16x8xf32> to vector<16x8xf32>
    %c0_44 = arith.constant 0 : index
    %c0_45 = arith.constant 0 : index
    %c0_46 = arith.constant 0 : index
    %125 = vector.load %arg4[%c0_44, %c0_45, %c0_46] : memref<12x8x64xf32, #tpu.memory_space<vmem>>, vector<1x8x64xf32>
    %126 = vector.shape_cast %125 : vector<1x8x64xf32> to vector<8x64xf32>
    %cst_47 = arith.constant dense<0.000000e+00> : vector<16x64xf32>
    %127 = tpu.matmul %124, %126, %cst_47 {dimension_numbers = #tpu.dot_dimension_numbers<[1], [0], [0], [1], [0, 0, 1, 1], [], []>} : vector<16x8xf32>, vector<8x64xf32>, vector<16x64xf32> -> vector<16x64xf32>
    %128 = arith.addf %122, %127 : vector<16x64xf32>
    %129 = vector.extract_strided_slice %120 {offsets = [1, 0, 0], sizes = [1, 16, 8], strides = [1, 1, 1]} : vector<12x16x8xf32> to vector<1x16x8xf32>
    %130 = vector.shape_cast %129 : vector<1x16x8xf32> to vector<16x8xf32>
    %c1_48 = arith.constant 1 : index
    %c0_49 = arith.constant 0 : index
    %c0_50 = arith.constant 0 : index
    %131 = vector.load %arg4[%c1_48, %c0_49, %c0_50] : memref<12x8x64xf32, #tpu.memory_space<vmem>>, vector<1x8x64xf32>
    %132 = vector.shape_cast %131 : vector<1x8x64xf32> to vector<8x64xf32>
    %cst_51 = arith.constant dense<0.000000e+00> : vector<16x64xf32>
    %133 = tpu.matmul %130, %132, %cst_51 {dimension_numbers = #tpu.dot_dimension_numbers<[1], [0], [0], [1], [0, 0, 1, 1], [], []>} : vector<16x8xf32>, vector<8x64xf32>, vector<16x64xf32> -> vector<16x64xf32>
    %134 = arith.addf %128, %133 : vector<16x64xf32>
    %135 = vector.extract_strided_slice %120 {offsets = [2, 0, 0], sizes = [1, 16, 8], strides = [1, 1, 1]} : vector<12x16x8xf32> to vector<1x16x8xf32>
    %136 = vector.shape_cast %135 : vector<1x16x8xf32> to vector<16x8xf32>
    %c2_52 = arith.constant 2 : index
    %c0_53 = arith.constant 0 : index
    %c0_54 = arith.constant 0 : index
    %137 = vector.load %arg4[%c2_52, %c0_53, %c0_54] : memref<12x8x64xf32, #tpu.memory_space<vmem>>, vector<1x8x64xf32>
    %138 = vector.shape_cast %137 : vector<1x8x64xf32> to vector<8x64xf32>
    %cst_55 = arith.constant dense<0.000000e+00> : vector<16x64xf32>
    %139 = tpu.matmul %136, %138, %cst_55 {dimension_numbers = #tpu.dot_dimension_numbers<[1], [0], [0], [1], [0, 0, 1, 1], [], []>} : vector<16x8xf32>, vector<8x64xf32>, vector<16x64xf32> -> vector<16x64xf32>
    %140 = arith.addf %134, %139 : vector<16x64xf32>
    %141 = vector.extract_strided_slice %120 {offsets = [3, 0, 0], sizes = [1, 16, 8], strides = [1, 1, 1]} : vector<12x16x8xf32> to vector<1x16x8xf32>
    %142 = vector.shape_cast %141 : vector<1x16x8xf32> to vector<16x8xf32>
    %c3 = arith.constant 3 : index
    %c0_56 = arith.constant 0 : index
    %c0_57 = arith.constant 0 : index
    %143 = vector.load %arg4[%c3, %c0_56, %c0_57] : memref<12x8x64xf32, #tpu.memory_space<vmem>>, vector<1x8x64xf32>
    %144 = vector.shape_cast %143 : vector<1x8x64xf32> to vector<8x64xf32>
    %cst_58 = arith.constant dense<0.000000e+00> : vector<16x64xf32>
    %145 = tpu.matmul %142, %144, %cst_58 {dimension_numbers = #tpu.dot_dimension_numbers<[1], [0], [0], [1], [0, 0, 1, 1], [], []>} : vector<16x8xf32>, vector<8x64xf32>, vector<16x64xf32> -> vector<16x64xf32>
    %146 = arith.addf %140, %145 : vector<16x64xf32>
    %147 = vector.extract_strided_slice %120 {offsets = [4, 0, 0], sizes = [1, 16, 8], strides = [1, 1, 1]} : vector<12x16x8xf32> to vector<1x16x8xf32>
    %148 = vector.shape_cast %147 : vector<1x16x8xf32> to vector<16x8xf32>
    %c4 = arith.constant 4 : index
    %c0_59 = arith.constant 0 : index
    %c0_60 = arith.constant 0 : index
    %149 = vector.load %arg4[%c4, %c0_59, %c0_60] : memref<12x8x64xf32, #tpu.memory_space<vmem>>, vector<1x8x64xf32>
    %150 = vector.shape_cast %149 : vector<1x8x64xf32> to vector<8x64xf32>
    %cst_61 = arith.constant dense<0.000000e+00> : vector<16x64xf32>
    %151 = tpu.matmul %148, %150, %cst_61 {dimension_numbers = #tpu.dot_dimension_numbers<[1], [0], [0], [1], [0, 0, 1, 1], [], []>} : vector<16x8xf32>, vector<8x64xf32>, vector<16x64xf32> -> vector<16x64xf32>
    %152 = arith.addf %146, %151 : vector<16x64xf32>
    %153 = vector.extract_strided_slice %120 {offsets = [5, 0, 0], sizes = [1, 16, 8], strides = [1, 1, 1]} : vector<12x16x8xf32> to vector<1x16x8xf32>
    %154 = vector.shape_cast %153 : vector<1x16x8xf32> to vector<16x8xf32>
    %c5 = arith.constant 5 : index
    %c0_62 = arith.constant 0 : index
    %c0_63 = arith.constant 0 : index
    %155 = vector.load %arg4[%c5, %c0_62, %c0_63] : memref<12x8x64xf32, #tpu.memory_space<vmem>>, vector<1x8x64xf32>
    %156 = vector.shape_cast %155 : vector<1x8x64xf32> to vector<8x64xf32>
    %cst_64 = arith.constant dense<0.000000e+00> : vector<16x64xf32>
    %157 = tpu.matmul %154, %156, %cst_64 {dimension_numbers = #tpu.dot_dimension_numbers<[1], [0], [0], [1], [0, 0, 1, 1], [], []>} : vector<16x8xf32>, vector<8x64xf32>, vector<16x64xf32> -> vector<16x64xf32>
    %158 = arith.addf %152, %157 : vector<16x64xf32>
    %159 = vector.extract_strided_slice %120 {offsets = [6, 0, 0], sizes = [1, 16, 8], strides = [1, 1, 1]} : vector<12x16x8xf32> to vector<1x16x8xf32>
    %160 = vector.shape_cast %159 : vector<1x16x8xf32> to vector<16x8xf32>
    %c6 = arith.constant 6 : index
    %c0_65 = arith.constant 0 : index
    %c0_66 = arith.constant 0 : index
    %161 = vector.load %arg4[%c6, %c0_65, %c0_66] : memref<12x8x64xf32, #tpu.memory_space<vmem>>, vector<1x8x64xf32>
    %162 = vector.shape_cast %161 : vector<1x8x64xf32> to vector<8x64xf32>
    %cst_67 = arith.constant dense<0.000000e+00> : vector<16x64xf32>
    %163 = tpu.matmul %160, %162, %cst_67 {dimension_numbers = #tpu.dot_dimension_numbers<[1], [0], [0], [1], [0, 0, 1, 1], [], []>} : vector<16x8xf32>, vector<8x64xf32>, vector<16x64xf32> -> vector<16x64xf32>
    %164 = arith.addf %158, %163 : vector<16x64xf32>
    %165 = vector.extract_strided_slice %120 {offsets = [7, 0, 0], sizes = [1, 16, 8], strides = [1, 1, 1]} : vector<12x16x8xf32> to vector<1x16x8xf32>
    %166 = vector.shape_cast %165 : vector<1x16x8xf32> to vector<16x8xf32>
    %c7 = arith.constant 7 : index
    %c0_68 = arith.constant 0 : index
    %c0_69 = arith.constant 0 : index
    %167 = vector.load %arg4[%c7, %c0_68, %c0_69] : memref<12x8x64xf32, #tpu.memory_space<vmem>>, vector<1x8x64xf32>
    %168 = vector.shape_cast %167 : vector<1x8x64xf32> to vector<8x64xf32>
    %cst_70 = arith.constant dense<0.000000e+00> : vector<16x64xf32>
    %169 = tpu.matmul %166, %168, %cst_70 {dimension_numbers = #tpu.dot_dimension_numbers<[1], [0], [0], [1], [0, 0, 1, 1], [], []>} : vector<16x8xf32>, vector<8x64xf32>, vector<16x64xf32> -> vector<16x64xf32>
    %170 = arith.addf %164, %169 : vector<16x64xf32>
    %171 = vector.extract_strided_slice %120 {offsets = [8, 0, 0], sizes = [1, 16, 8], strides = [1, 1, 1]} : vector<12x16x8xf32> to vector<1x16x8xf32>
    %172 = vector.shape_cast %171 : vector<1x16x8xf32> to vector<16x8xf32>
    %c8 = arith.constant 8 : index
    %c0_71 = arith.constant 0 : index
    %c0_72 = arith.constant 0 : index
    %173 = vector.load %arg4[%c8, %c0_71, %c0_72] : memref<12x8x64xf32, #tpu.memory_space<vmem>>, vector<1x8x64xf32>
    %174 = vector.shape_cast %173 : vector<1x8x64xf32> to vector<8x64xf32>
    %cst_73 = arith.constant dense<0.000000e+00> : vector<16x64xf32>
    %175 = tpu.matmul %172, %174, %cst_73 {dimension_numbers = #tpu.dot_dimension_numbers<[1], [0], [0], [1], [0, 0, 1, 1], [], []>} : vector<16x8xf32>, vector<8x64xf32>, vector<16x64xf32> -> vector<16x64xf32>
    %176 = arith.addf %170, %175 : vector<16x64xf32>
    %177 = vector.extract_strided_slice %120 {offsets = [9, 0, 0], sizes = [1, 16, 8], strides = [1, 1, 1]} : vector<12x16x8xf32> to vector<1x16x8xf32>
    %178 = vector.shape_cast %177 : vector<1x16x8xf32> to vector<16x8xf32>
    %c9 = arith.constant 9 : index
    %c0_74 = arith.constant 0 : index
    %c0_75 = arith.constant 0 : index
    %179 = vector.load %arg4[%c9, %c0_74, %c0_75] : memref<12x8x64xf32, #tpu.memory_space<vmem>>, vector<1x8x64xf32>
    %180 = vector.shape_cast %179 : vector<1x8x64xf32> to vector<8x64xf32>
    %cst_76 = arith.constant dense<0.000000e+00> : vector<16x64xf32>
    %181 = tpu.matmul %178, %180, %cst_76 {dimension_numbers = #tpu.dot_dimension_numbers<[1], [0], [0], [1], [0, 0, 1, 1], [], []>} : vector<16x8xf32>, vector<8x64xf32>, vector<16x64xf32> -> vector<16x64xf32>
    %182 = arith.addf %176, %181 : vector<16x64xf32>
    %183 = vector.extract_strided_slice %120 {offsets = [10, 0, 0], sizes = [1, 16, 8], strides = [1, 1, 1]} : vector<12x16x8xf32> to vector<1x16x8xf32>
    %184 = vector.shape_cast %183 : vector<1x16x8xf32> to vector<16x8xf32>
    %c10 = arith.constant 10 : index
    %c0_77 = arith.constant 0 : index
    %c0_78 = arith.constant 0 : index
    %185 = vector.load %arg4[%c10, %c0_77, %c0_78] : memref<12x8x64xf32, #tpu.memory_space<vmem>>, vector<1x8x64xf32>
    %186 = vector.shape_cast %185 : vector<1x8x64xf32> to vector<8x64xf32>
    %cst_79 = arith.constant dense<0.000000e+00> : vector<16x64xf32>
    %187 = tpu.matmul %184, %186, %cst_79 {dimension_numbers = #tpu.dot_dimension_numbers<[1], [0], [0], [1], [0, 0, 1, 1], [], []>} : vector<16x8xf32>, vector<8x64xf32>, vector<16x64xf32> -> vector<16x64xf32>
    %188 = arith.addf %182, %187 : vector<16x64xf32>
    %189 = vector.extract_strided_slice %120 {offsets = [11, 0, 0], sizes = [1, 16, 8], strides = [1, 1, 1]} : vector<12x16x8xf32> to vector<1x16x8xf32>
    %190 = vector.shape_cast %189 : vector<1x16x8xf32> to vector<16x8xf32>
    %c11 = arith.constant 11 : index
    %c0_80 = arith.constant 0 : index
    %c0_81 = arith.constant 0 : index
    %191 = vector.load %arg4[%c11, %c0_80, %c0_81] : memref<12x8x64xf32, #tpu.memory_space<vmem>>, vector<1x8x64xf32>
    %192 = vector.shape_cast %191 : vector<1x8x64xf32> to vector<8x64xf32>
    %cst_82 = arith.constant dense<0.000000e+00> : vector<16x64xf32>
    %193 = tpu.matmul %190, %192, %cst_82 {dimension_numbers = #tpu.dot_dimension_numbers<[1], [0], [0], [1], [0, 0, 1, 1], [], []>} : vector<16x8xf32>, vector<8x64xf32>, vector<16x64xf32> -> vector<16x64xf32>
    %194 = arith.addf %188, %193 : vector<16x64xf32>
    %195 = vector.extract_strided_slice %121 {offsets = [0, 0], sizes = [1, 64], strides = [1, 1]} : vector<4x64xf32> to vector<1x64xf32>
    %196 = vector.broadcast %195 : vector<1x64xf32> to vector<16x64xf32>
    %197 = arith.addf %194, %196 : vector<16x64xf32>
    %cst_83 = arith.constant dense<0.000000e+00> : vector<16xf32>
    %198 = vector.multi_reduction <add>, %197, %cst_83 [1] : vector<16x64xf32> to vector<16xf32>
    %199 = vector.shape_cast %198 : vector<16xf32> to vector<16x1xf32>
    %cst_84 = arith.constant 6.400000e+01 : f32
    %200 = vector.broadcast %cst_84 : f32 to vector<16x1xf32>
    %201 = arith.divf %199, %200 : vector<16x1xf32>
    %202 = vector.broadcast %201 : vector<16x1xf32> to vector<16x64xf32>
    %203 = arith.subf %197, %202 : vector<16x64xf32>
    %204 = arith.mulf %203, %203 : vector<16x64xf32>
    %cst_85 = arith.constant dense<0.000000e+00> : vector<16xf32>
    %205 = vector.multi_reduction <add>, %204, %cst_85 [1] : vector<16x64xf32> to vector<16xf32>
    %206 = vector.shape_cast %205 : vector<16xf32> to vector<16x1xf32>
    %cst_86 = arith.constant 6.400000e+01 : f32
    %207 = vector.broadcast %cst_86 : f32 to vector<16x1xf32>
    %208 = arith.divf %206, %207 : vector<16x1xf32>
    %209 = vector.broadcast %201 : vector<16x1xf32> to vector<16x64xf32>
    %210 = arith.subf %197, %209 : vector<16x64xf32>
    %cst_87 = arith.constant 9.99999974E-6 : f32
    %211 = vector.broadcast %cst_87 : f32 to vector<16x1xf32>
    %212 = arith.addf %208, %211 : vector<16x1xf32>
    %213 = math.rsqrt %212 : vector<16x1xf32>
    %214 = vector.broadcast %213 : vector<16x1xf32> to vector<16x64xf32>
    %215 = arith.mulf %210, %214 : vector<16x64xf32>
    %216 = vector.extract_strided_slice %121 {offsets = [1, 0], sizes = [1, 64], strides = [1, 1]} : vector<4x64xf32> to vector<1x64xf32>
    %217 = vector.broadcast %216 : vector<1x64xf32> to vector<16x64xf32>
    %218 = arith.mulf %215, %217 : vector<16x64xf32>
    %219 = vector.extract_strided_slice %121 {offsets = [2, 0], sizes = [1, 64], strides = [1, 1]} : vector<4x64xf32> to vector<1x64xf32>
    %220 = vector.broadcast %219 : vector<1x64xf32> to vector<16x64xf32>
    %221 = arith.addf %218, %220 : vector<16x64xf32>
    %cst_88 = arith.constant 0.000000e+00 : f32
    %222 = vector.broadcast %cst_88 : f32 to vector<16x64xf32>
    %223 = arith.maximumf %221, %222 : vector<16x64xf32>
    %c0_89 = arith.constant 0 : index
    %c0_90 = arith.constant 0 : index
    %224 = vector.load %arg5[%c0_89, %c0_90] : memref<64x32xf32, #tpu.memory_space<vmem>>, vector<64x32xf32>
    %cst_91 = arith.constant dense<0.000000e+00> : vector<16x32xf32>
    %225 = tpu.matmul %223, %224, %cst_91 {dimension_numbers = #tpu.dot_dimension_numbers<[1], [0], [0], [1], [0, 0, 1, 1], [], []>} : vector<16x64xf32>, vector<64x32xf32>, vector<16x32xf32> -> vector<16x32xf32>
    %226 = vector.extract_strided_slice %121 {offsets = [3, 0], sizes = [1, 32], strides = [1, 1]} : vector<4x64xf32> to vector<1x32xf32>
    %227 = vector.broadcast %226 : vector<1x32xf32> to vector<16x32xf32>
    %228 = arith.addf %225, %227 : vector<16x32xf32>
    %c0_92 = arith.constant 0 : index
    %c0_93 = arith.constant 0 : index
    %229 = vector.load %arg7[%c0_92, %c0_93] : memref<16x32xf32, #tpu.memory_space<vmem>>, vector<16x32xf32>
    tpu.vector_store %arg7[%c0_92, %c0_93], %228 {strides = array<i32>} : memref<16x32xf32, #tpu.memory_space<vmem>>, vector<16x32xf32>,
    return
  }
}

</mosaic_0001>

<bundles_post_ra>
// kernel: multi_timescale_attention.1
= control target key start
LH: loop header
LB: loop body
LE: loop exit
PB: predicated region body
PF: predicated region fallthrough
CT: control target
= control target key end

     0   :  { %vm42_vm0 = vcmask 261120   ;;  %s5990_s0 = inlined_call_operand.vmem [shape: f32[3,16,32], index: 0, kind: input, shape index: {}]   ;;  %s5991_s1 = inlined_call_operand.vmem [shape: f32[3,32,96], index: 1, kind: input, shape index: {}]   ;;  %s5992_s2 = inlined_call_operand.vmem [shape: f32[3,1,96], index: 2, kind: input, shape index: {}]   ;;  %s5993_s3 = inlined_call_operand.vmem [shape: f32[2,12,16,16], index: 3, kind: input, shape index: {}]   ;;  %s5994_s4 = inlined_call_operand.vmem [shape: f32[12,8,64], index: 4, kind: input, shape index: {}]   ;;  %s5995_s5 = inlined_call_operand.vmem [shape: f32[64,32], index: 5, kind: input, shape index: {}]   ;;  %s5996_s6 = inlined_call_operand.vmem [shape: f32[4,64], index: 6, kind: input, shape index: {}]   ;;  %s5997_s7 = inlined_call_operand.hbm [shape: f32[16,32], index: 7, kind: output, shape index: {0}]   ;;  %s5998_s8 = inlined_call_operand.vmem [shape: f32[12,16,16], index: 8, kind: output, shape index: {1}]  }
   0x1   :  { %v31_v0 = vld [vmem:[%s5991_s1] sm:$0xff]  ;;  %v32_v1 = vld [vmem:[%s5991_s1 + $0x8] sm:$0xff]  ;;  %v33_v2 = vld [vmem:[%s5991_s1 + $0x10] sm:$0xff] }
   0x2   :  { %v4608_v3 = vpack.c.bf16 %v32_v1, %v31_v0  ;;  %v34_v4 = vld [vmem:[%s5991_s1 + $0x18] sm:$0xff]  ;;  %v29_v5 = vld [vmem:[%s5990_s0] sm:$0xff]  ;;  %v4018_v8 = vld [vmem:[%s5991_s1 + $0x28] sm:$0xff] }
   0x3   :  { %v4612_v6 = vpack.c.bf16 %v34_v4, %v33_v2  ;;  %4336 = vmatprep.mubr.msk.f32.mxu1 %vm42_vm0, %v29_v5  ;;  %v4017_v7 = vld [vmem:[%s5991_s1 + $0x20] sm:$0xff]  ;;  %v4019_v10 = vld [vmem:[%s5991_s1 + $0x30] sm:$0xff]  ;;  %v4020_v11 = vld [vmem:[%s5991_s1 + $0x38] sm:$0xff] }
   0x4   :  { %4609 = vmatprep.subr.bf16.mxu1 %v4608_v3  ;;  %v4616_v9 = vpack.c.bf16 %v4018_v8, %v4017_v7 }
   0x5   :  { %4611 = vmatpush3.bf16.msra.mxu1 %v4608_v3 }
   0x6   :  { %4613 = vmatprep.subr.bf16.mxu1 %v4612_v6 }
   0x7   :  { %14 = vsyncpa [#allocation3], 0  ;;  %v30_v12 = vld [vmem:[%s5990_s0 + $0x8] sm:$0xff]  ;;  %v4620_v13 = vpack.c.bf16 %v4020_v11, %v4019_v10  ;;  %v4015_v14 = vld [vmem:[%s5990_s0 + $0x10] sm:$0xff]  ;;  %vm478_vm1 = vcmask 64512   ;;  %s5038_s20 = smov 120  }
   0x8   :  { %v4027_v15 = vld [vmem:[%s5991_s1 + $0x40] sm:$0xff]  ;;  %v4028_v16 = vld [vmem:[%s5991_s1 + $0x48] sm:$0xff]  ;;  %v4029_v18 = vld [vmem:[%s5991_s1 + $0x50] sm:$0xff]  ;;  %s5039_s22 = smov 112   ;;  %s5040_s23 = smov 96   ;;  %vm1572_vm3 = vcmask 130048  }
   0x9   :  { %4615 = vmatpush3.bf16.msra.mxu1 %v4612_v6  ;;  %v4624_v17 = vpack.c.bf16 %v4028_v16, %v4027_v15  ;;  %v4030_v19 = vld [vmem:[%s5991_s1 + $0x58] sm:$0xff]  ;;  %v4025_v22 = vld [vmem:[%s5990_s0 + $0x20] sm:$0xff]  ;;  %v4026_v23 = vld [vmem:[%s5990_s0 + $0x28] sm:$0xff]  ;;  %s5041_s24 = smov 104   ;;  %s5042_s25 = smov 80   ;;  %vm3855_vm4 = vcmask 523264  }
   0xa   :  { %4617 = vmatprep.subr.bf16.mxu1 %v4616_v9  ;;  %v4016_v20 = vld [vmem:[%s5990_s0 + $0x18] sm:$0xff]  ;;  %v4628_v21 = vpack.c.bf16 %v4030_v19, %v4029_v18  ;;  %v4012_v24 = vld [vmem:[%s5992_s2] ss:$0 sm:$0xff]  ;;  %v4022_v29 = vld [vmem:[%s5992_s2 + $0x1] ss:$0 sm:$0xff]  ;;  %s5043_s26 = smov 88  }
   0xb   :  { %vm5170_vm2 = vmpackc.low %vm478_vm1, %vm478_vm1  ;;  %s5044_s27 = smov 64   ;;  %s5045_s28 = smov 72   ;;  %v4032_v38 = vld [vmem:[%s5992_s2 + $0x2] ss:$0 sm:$0xff] }
   0xc   :  { %4337 = vmatmul.mubr.msk.f32.vlgmr.msra.gmra.mrb[0].mxu1 %vm42_vm0, %v30_v12  ;;  %s5046_s29 = smov 48   ;;  %s5047_s30 = smov 56  }
   0xd   :  { %4619 = vmatpush3.bf16.msra.mxu1 %v4616_v9  ;;  %4347 = vmatprep.mubr.msk.f32.mxu1 %vm42_vm0, %v4015_v14  ;;  %s5048_s11 = smov 40  }
   0xe   :  { %4621 = vmatprep.subr.bf16.mxu1 %v4620_v13 }
  0x11   :  { %4623 = vmatpush3.bf16.msra.mxu1 %v4620_v13 }
  0x12   :  { %4625 = vmatprep.subr.bf16.mxu1 %v4624_v17 }
  0x14   :  { %4348 = vmatmul.mubr.msk.f32.vlgmr.msra.gmra.mrb[2].mxu1 %vm42_vm0, %v4016_v20 }
  0x15   :  { %4627 = vmatpush3.bf16.msra.mxu1 %v4624_v17  ;;  %4358 = vmatprep.mubr.msk.f32.mxu1 %vm42_vm0, %v4025_v22 }
  0x16   :  { %4629 = vmatprep.subr.bf16.mxu1 %v4628_v21 }
  0x19   :  { %4631 = vmatpush3.bf16.msra.mxu1 %v4628_v21 }
  0x1c   :  { %4359 = vmatmul.mubr.msk.f32.vlgmr.msra.gmra.mrb[4].mxu1 %vm42_vm0, %v4026_v23 }
  0xdf   :  { %v4338_v25 = vpop.f32.mrb[0].mxu1 }
  0xe0   :  { %v5160_v26 = vadd.f32 %v4338_v25, %v4012_v24  ;;  %v115_v27 = vpop.f32.mrb[1].mxu1 }
  0xe1   :  { %v116_v28 = vadd.f32 %v4012_v24, %v115_v27 }
  0xe2   :  { %322 = vrot.lane.b32.xlu1 %v5160_v26, %s5038_s20 }
  0xe3   :  { %4365 = vmatprep.mubr.msk.f32.mxu1 %vm478_vm1, %v116_v28 }
  0xe7   :  { %v4349_v30 = vpop.f32.mrb[2].mxu1 }
  0xe8   :  { %v218_v31 = vadd.f32 %v4349_v30, %v4022_v29  ;;  %v212_v32 = vpop.f32.mrb[3].mxu1 }
  0xe9   :  { %v213_v33 = vadd.f32 %v4022_v29, %v212_v32 }
  0xeb   :  { %v4809_v34 = vpack.i.bf16 %v218_v31, %v213_v33  ;;  %v4632_v35 = vpack.c.bf16 %v218_v31, %v213_v33 }
  0xed   :  { %4810 = vrot.lane.b32.xlu1 %v4809_v34, %s5039_s22  ;;  %4805 = vrot.lane.b32.xlu0 %v4809_v34, %s5038_s20 }
  0xee   :  { %4634 = vmatprep.subr.msk.bf16.mxu1 %vm5170_vm2, %v4632_v35 }
  0xef   :  { %4637 = vmatpush3.bf16.xpose.msk.msra.mxu1 %vm5170_vm2, %v4632_v35  ;;  %v4360_v37 = vpop.f32.mrb[4].mxu1 }
  0xf0   :  { %v5221_v39 = vadd.f32 %v4360_v37, %v4032_v38  ;;  %v309_v40 = vpop.f32.mrb[5].mxu1 }
  0xf1   :  { %324 = vrot.lane.b32.xlu1 %v116_v28, %s5039_s22  ;;  %320 = vrot.lane.b32.xlu0 %v116_v28, %s5038_s20  ;;  %v5223_v41 = vadd.f32 %v4032_v38, %v309_v40 }
  0xf3   :  { %v5227_v42 = vpack.i.bf16 %v5221_v39, %v5223_v41  ;;  %v4704_v37 = vpack.c.bf16 %v5221_v39, %v5223_v41 }
  0xf5   :  { %4820 = vrot.lane.b32.xlu1 %v4809_v34, %s5040_s23  ;;  %4815 = vrot.lane.b32.xlu0 %v4809_v34, %s5041_s24 }
  0xf6   :  { %4366 = vmatmul.mubr.msk.f32.vlgmr.msra.gmra.mrb[6].mxu1 %vm478_vm1, %v5160_v26 }
  0xf9   :  { %330 = vrot.lane.b32.xlu1 %v5160_v26, %s5041_s24  ;;  %326 = vrot.lane.b32.xlu0 %v5160_v26, %s5039_s22 }
  0xfd   :  { %332 = vrot.lane.b32.xlu1 %v116_v28, %s5040_s23  ;;  %328 = vrot.lane.b32.xlu0 %v116_v28, %s5041_s24 }
 0x101   :  { %4830 = vrot.lane.b32.xlu1 %v4809_v34, %s5042_s25  ;;  %4825 = vrot.lane.b32.xlu0 %v4809_v34, %s5043_s26 }
 0x105   :  { %338 = vrot.lane.b32.xlu1 %v5160_v26, %s5043_s26  ;;  %334 = vrot.lane.b32.xlu0 %v5160_v26, %s5040_s23 }
 0x109   :  { %340 = vrot.lane.b32.xlu1 %v116_v28, %s5042_s25  ;;  %336 = vrot.lane.b32.xlu0 %v116_v28, %s5043_s26 }
 0x10d   :  { %4840 = vrot.lane.b32.xlu1 %v4809_v34, %s5044_s27  ;;  %4835 = vrot.lane.b32.xlu0 %v4809_v34, %s5045_s28 }
 0x111   :  { %346 = vrot.lane.b32.xlu1 %v5160_v26, %s5045_s28  ;;  %342 = vrot.lane.b32.xlu0 %v5160_v26, %s5042_s25 }
 0x115   :  { %348 = vrot.lane.b32.xlu1 %v116_v28, %s5044_s27  ;;  %344 = vrot.lane.b32.xlu0 %v116_v28, %s5045_s28 }
 0x119   :  { %4850 = vrot.lane.b32.xlu1 %v4809_v34, %s5046_s29  ;;  %4845 = vrot.lane.b32.xlu0 %v4809_v34, %s5047_s30 }
 0x11d   :  { %354 = vrot.lane.b32.xlu1 %v5160_v26, %s5047_s30  ;;  %350 = vrot.lane.b32.xlu0 %v5160_v26, %s5044_s27 }
 0x121   :  { %356 = vrot.lane.b32.xlu1 %v116_v28, %s5046_s29  ;;  %352 = vrot.lane.b32.xlu0 %v116_v28, %s5047_s30 }
 0x125   :  { %360 = vrot.lane.b32.xlu1 %v116_v28, %s5048_s11  ;;  %4855 = vrot.lane.b32.xlu0 %v4809_v34, %s5048_s11 }
 0x129   :  { %358 = vrot.lane.b32.xlu0 %v5160_v26, %s5046_s29  ;;  %4865 = vrot.lane.b32.xlu1 %v5227_v42, %s5039_s22 }
 0x12d   :  { %362 = vrot.lane.b32.xlu0 %v5160_v26, %s5048_s11 }
 0x131   :  { %4860 = vrot.lane.b32.xlu0 %v5227_v42, %s5038_s20 }
 0x135   :  { %4870 = vrot.lane.b32.xlu0 %v5227_v42, %s5041_s24 }
 0x154   :  { %v323_v43 = vpop.permute.xlu1 %322 }
 0x15f   :  { %v4811_v44 = vpop.permute.xlu1 %4810  ;;  %v4806_v45 = vpop.permute.xlu0 %4805 }
 0x160   :  { %v4813_v46 = vunpack.i.h.bf16 %v4811_v44  ;;  %v4812_v47 = vunpack.i.l.bf16 %v4811_v44  ;;  %v4808_v48 = vunpack.i.h.bf16 %v4806_v45  ;;  %v4807_v49 = vunpack.i.l.bf16 %v4806_v45 }
 0x162   :  { %v4644_v50 = vpack.c.bf16 %v4813_v46, %v4812_v47  ;;  %v4638_v51 = vpack.c.bf16 %v4808_v48, %v4807_v49  ;;  %v1476_v48 = vld [vmem:[%s5993_s3 + $0x8] sm:$0xff]  ;;  %v1475_v49 = vld [vmem:[%s5993_s3] sm:$0xff] }
 0x163   :  { %v325_v52 = vpop.permute.xlu1 %324  ;;  %v321_v53 = vpop.permute.xlu0 %320 }
 0x164   :  { %4640 = vmatprep.subr.msk.bf16.mxu0 %vm5170_vm2, %v4638_v51  ;;  %4372 = vmatprep.mubr.msk.f32.mxu0 %vm478_vm1, %v321_v53  ;;  %v4083_v53 = vld [vmem:[%s5993_s3 + $0xc0] sm:$0xff] }
 0x165   :  { %4646 = vmatprep.subr.msk.bf16.mxu1 %vm5170_vm2, %v4644_v50  ;;  %4379 = vmatprep.mubr.msk.f32.mxu1 %vm478_vm1, %v325_v52 }
 0x166   :  { %4643 = vmatpush3.bf16.xpose.msk.msra.mxu0 %vm5170_vm2, %v4638_v51  ;;  %4649 = vmatpush3.bf16.xpose.msk.msra.mxu1 %vm5170_vm2, %v4644_v50  ;;  %v4084_v51 = vld [vmem:[%s5993_s3 + $0xc8] sm:$0xff] }
 0x167   :  { %v4821_v54 = vpop.permute.xlu1 %4820  ;;  %v4816_v55 = vpop.permute.xlu0 %4815 }
 0x168   :  { %v4823_v56 = vunpack.i.h.bf16 %v4821_v54  ;;  %v4822_v57 = vunpack.i.l.bf16 %v4821_v54  ;;  %v4818_v58 = vunpack.i.h.bf16 %v4816_v55  ;;  %v4817_v59 = vunpack.i.l.bf16 %v4816_v55 }
 0x16a   :  { %v4656_v60 = vpack.c.bf16 %v4823_v56, %v4822_v57  ;;  %v4650_v61 = vpack.c.bf16 %v4818_v58, %v4817_v59 }
 0x16b   :  { %v331_v62 = vpop.permute.xlu1 %330  ;;  %v327_v63 = vpop.permute.xlu0 %326 }
 0x16c   :  { %4652 = vmatprep.subr.msk.bf16.mxu0 %vm5170_vm2, %v4650_v61  ;;  %4658 = vmatprep.subr.msk.bf16.mxu1 %vm5170_vm2, %v4656_v60 }
 0x16d   :  { %4373 = vmatmul.mubr.msk.f32.vlgmr.msra.gmra.mrb[0].mxu0 %vm478_vm1, %v323_v43  ;;  %4380 = vmatmul.mubr.msk.f32.vlgmr.msra.gmra.mrb[8].mxu1 %vm478_vm1, %v327_v63 }
 0x16e   :  { %4655 = vmatpush3.bf16.xpose.msk.msra.mxu0 %vm5170_vm2, %v4650_v61  ;;  %4661 = vmatpush3.bf16.xpose.msk.msra.mxu1 %vm5170_vm2, %v4656_v60 }
 0x16f   :  { %v333_v0 = vpop.permute.xlu1 %332  ;;  %v329_v1 = vpop.permute.xlu0 %328 }
 0x170   :  { %4386 = vmatprep.mubr.msk.f32.mxu0 %vm478_vm1, %v329_v1  ;;  %4393 = vmatprep.mubr.msk.f32.mxu1 %vm478_vm1, %v333_v0 }
 0x173   :  { %v4831_v2 = vpop.permute.xlu1 %4830  ;;  %v4826_v3 = vpop.permute.xlu0 %4825 }
 0x174   :  { %v4833_v4 = vunpack.i.h.bf16 %v4831_v2  ;;  %v4832_v5 = vunpack.i.l.bf16 %v4831_v2  ;;  %v4828_v6 = vunpack.i.h.bf16 %v4826_v3  ;;  %v4827_v7 = vunpack.i.l.bf16 %v4826_v3  ;;  %v1478_v3 = vld [vmem:[%s5993_s3 + $0x18] sm:$0xff] }
 0x175   :  { %4387 = vmatmul.mubr.msk.f32.vlgmr.msra.gmra.mrb[2].mxu0 %vm478_vm1, %v331_v62 }
 0x176   :  { %v4668_v8 = vpack.c.bf16 %v4833_v4, %v4832_v5  ;;  %v4662_v9 = vpack.c.bf16 %v4828_v6, %v4827_v7  ;;  %v1480_v4 = vld [vmem:[%s5993_s3 + $0x28] sm:$0xff]  ;;  %v1477_v5 = vld [vmem:[%s5993_s3 + $0x10] sm:$0xff] }
 0x177   :  { %v339_v10 = vpop.permute.xlu1 %338  ;;  %v335_v11 = vpop.permute.xlu0 %334 }
 0x178   :  { %4394 = vmatmul.mubr.msk.f32.vlgmr.msra.gmra.mrb[10].mxu1 %vm478_vm1, %v335_v11  ;;  %4664 = vmatprep.subr.msk.bf16.mxu0 %vm5170_vm2, %v4662_v9 }
 0x179   :  { %4670 = vmatprep.subr.msk.bf16.mxu1 %vm5170_vm2, %v4668_v8  ;;  %4667 = vmatpush3.bf16.xpose.msk.msra.mxu0 %vm5170_vm2, %v4662_v9 }
 0x17a   :  { %4673 = vmatpush3.bf16.xpose.msk.msra.mxu1 %vm5170_vm2, %v4668_v8  ;;  %v4086_v8 = vld [vmem:[%s5993_s3 + $0xd8] sm:$0xff] }
 0x17b   :  { %v341_v12 = vpop.permute.xlu1 %340  ;;  %v337_v13 = vpop.permute.xlu0 %336 }
 0x17c   :  { %4400 = vmatprep.mubr.msk.f32.mxu0 %vm478_vm1, %v337_v13  ;;  %4407 = vmatprep.mubr.msk.f32.mxu1 %vm478_vm1, %v341_v12  ;;  %v4085_v13 = vld [vmem:[%s5993_s3 + $0xd0] sm:$0xff] }
 0x17f   :  { %v4841_v14 = vpop.permute.xlu1 %4840  ;;  %v4836_v15 = vpop.permute.xlu0 %4835 }
 0x180   :  { %v4843_v16 = vunpack.i.h.bf16 %v4841_v14  ;;  %v4842_v17 = vunpack.i.l.bf16 %v4841_v14  ;;  %v4838_v18 = vunpack.i.h.bf16 %v4836_v15  ;;  %v4837_v19 = vunpack.i.l.bf16 %v4836_v15  ;;  %4401 = vmatmul.mubr.msk.f32.vlgmr.msra.gmra.mrb[4].mxu0 %vm478_vm1, %v339_v10  ;;  %v4088_v15 = vld [vmem:[%s5993_s3 + $0xe8] sm:$0xff] }
 0x182   :  { %v4680_v20 = vpack.c.bf16 %v4843_v16, %v4842_v17  ;;  %v4674_v21 = vpack.c.bf16 %v4838_v18, %v4837_v19 }
 0x183   :  { %v347_v22 = vpop.permute.xlu1 %346  ;;  %v343_v23 = vpop.permute.xlu0 %342 }
 0x184   :  { %4408 = vmatmul.mubr.msk.f32.vlgmr.msra.gmra.mrb[12].mxu1 %vm478_vm1, %v343_v23  ;;  %4676 = vmatprep.subr.msk.bf16.mxu0 %vm5170_vm2, %v4674_v21 }
 0x185   :  { %4682 = vmatprep.subr.msk.bf16.mxu1 %vm5170_vm2, %v4680_v20  ;;  %4679 = vmatpush3.bf16.xpose.msk.msra.mxu0 %vm5170_vm2, %v4674_v21 }
 0x186   :  { %4685 = vmatpush3.bf16.xpose.msk.msra.mxu1 %vm5170_vm2, %v4680_v20 }
 0x187   :  { %v349_v24 = vpop.permute.xlu1 %348  ;;  %v345_v25 = vpop.permute.xlu0 %344 }
 0x188   :  { %4414 = vmatprep.mubr.msk.f32.mxu0 %vm478_vm1, %v345_v25  ;;  %4421 = vmatprep.mubr.msk.f32.mxu1 %vm478_vm1, %v349_v24 }
 0x18b   :  { %v4851_v26 = vpop.permute.xlu1 %4850  ;;  %v4846_v27 = vpop.permute.xlu0 %4845 }
 0x18c   :  { %v4853_v28 = vunpack.i.h.bf16 %v4851_v26  ;;  %v4852_v29 = vunpack.i.l.bf16 %v4851_v26  ;;  %v4848_v30 = vunpack.i.h.bf16 %v4846_v27  ;;  %v4847_v31 = vunpack.i.l.bf16 %v4846_v27  ;;  %4415 = vmatmul.mubr.msk.f32.vlgmr.msra.gmra.mrb[6].mxu0 %vm478_vm1, %v347_v22 }
 0x18e   :  { %v4692_v32 = vpack.c.bf16 %v4853_v28, %v4852_v29  ;;  %v4686_v33 = vpack.c.bf16 %v4848_v30, %v4847_v31 }
 0x18f   :  { %v355_v34 = vpop.permute.xlu1 %354  ;;  %v351_v35 = vpop.permute.xlu0 %350 }
 0x190   :  { %4422 = vmatmul.mubr.msk.f32.vlgmr.msra.gmra.mrb[14].mxu1 %vm478_vm1, %v351_v35  ;;  %4688 = vmatprep.subr.msk.bf16.mxu0 %vm5170_vm2, %v4686_v33 }
 0x191   :  { %4694 = vmatprep.subr.msk.bf16.mxu1 %vm5170_vm2, %v4692_v32  ;;  %4691 = vmatpush3.bf16.xpose.msk.msra.mxu0 %vm5170_vm2, %v4686_v33 }
 0x192   :  { %4697 = vmatpush3.bf16.xpose.msk.msra.mxu1 %vm5170_vm2, %v4692_v32 }
 0x193   :  { %v357_v38 = vpop.permute.xlu1 %356  ;;  %v353_v40 = vpop.permute.xlu0 %352  ;;  %4705 = vmatprep.subr.bf16.mxu1 %v4704_v37 }
 0x194   :  { %4428 = vmatprep.mubr.msk.f32.mxu0 %vm478_vm1, %v353_v40  ;;  %4435 = vmatprep.mubr.msk.f32.mxu1 %vm478_vm1, %v357_v38  ;;  %v1479_v38 = vld [vmem:[%s5993_s3 + $0x20] sm:$0xff] }
 0x197   :  { %v361_v39 = vpop.permute.xlu1 %360  ;;  %v4856_v41 = vpop.permute.xlu0 %4855 }
 0x198   :  { %v4858_v43 = vunpack.i.h.bf16 %v4856_v41  ;;  %v4857_v44 = vunpack.i.l.bf16 %v4856_v41  ;;  %4429 = vmatmul.mubr.msk.f32.vlgmr.msra.gmra.mrb[8].mxu0 %vm478_vm1, %v355_v34  ;;  %v1482_v41 = vld [vmem:[%s5993_s3 + $0x38] sm:$0xff] }
 0x199   :  { %4442 = vmatprep.mubr.msk.f32.mxu0 %vm478_vm1, %v361_v39 }
 0x19a   :  { %v4698_v45 = vpack.c.bf16 %v4858_v43, %v4857_v44  ;;  %v1481_v43 = vld [vmem:[%s5993_s3 + $0x30] sm:$0xff]  ;;  %v4087_v44 = vld [vmem:[%s5993_s3 + $0xe0] sm:$0xff] }
 0x19b   :  { %v359_v46 = vpop.permute.xlu0 %358  ;;  %v4866_v63 = vpop.permute.xlu1 %4865 }
 0x19c   :  { %4436 = vmatmul.mubr.msk.f32.vlgmr.msra.gmra.mrb[16].mxu1 %vm478_vm1, %v359_v46  ;;  %4700 = vmatprep.subr.msk.bf16.mxu0 %vm5170_vm2, %v4698_v45  ;;  %v4868_v0 = vunpack.i.h.bf16 %v4866_v63  ;;  %v4867_v1 = vunpack.i.l.bf16 %v4866_v63  ;;  %v1485_v63 = vld [vmem:[%s5993_s3 + $0x50] sm:$0xff] }
 0x19d   :  { %4703 = vmatpush3.bf16.xpose.msk.msra.mxu0 %vm5170_vm2, %v4698_v45  ;;  %4707 = vmatpush3.bf16.msra.mxu1 %v4704_v37 }
 0x19e   :  { %v4712_v2 = vpack.c.bf16 %v4868_v0, %v4867_v1  ;;  %v4091_v0 = vld [vmem:[%s5993_s3 + $0x100] sm:$0xff] }
 0x19f   :  { %v363_v47 = vpop.permute.xlu0 %362 }
 0x1a0   :  { %4713 = vmatprep.subr.bf16.mxu0 %v4712_v2 }
 0x1a3   :  { %v4861_v57 = vpop.permute.xlu0 %4860 }
 0x1a4   :  { %4443 = vmatmul.mubr.msk.f32.vlgmr.msra.gmra.mrb[10].mxu0 %vm478_vm1, %v363_v47  ;;  %v4863_v59 = vunpack.i.h.bf16 %v4861_v57  ;;  %v4862_v60 = vunpack.i.l.bf16 %v4861_v57  ;;  %v1484_v47 = vld [vmem:[%s5993_s3 + $0x48] sm:$0xff] }
 0x1a5   :  { %4715 = vmatpush3.bf16.msra.mxu0 %v4712_v2 }
 0x1a6   :  { %v5327_v62 = vpack.c.bf16 %v4863_v59, %v4862_v60 }
 0x1a8   :  { %4709 = vmatprep.subr.bf16.mxu1 %v5327_v62 }
 0x1c9   :  { %v4367_v50 = vpop.f32.mrb[6].mxu1 }
 0x1ca   :  { %v1500_v52 = vmul.f32 %v4367_v50, %v1476_v48  ;;  %v553_v36 = vpop.f32.mrb[7].mxu1  ;;  %v4090_v50 = vld [vmem:[%s5993_s3 + $0xf8] sm:$0xff] }
 0x1cb   :  { %v1499_v54 = vmul.f32 %v1475_v49, %v553_v36  ;;  %v4089_v36 = vld [vmem:[%s5993_s3 + $0xf0] sm:$0xff] }
 0x1cc   :  { %v5319_v55 = vadd.f32 %v4084_v51, %v1500_v52  ;;  %v1483_v51 = vld [vmem:[%s5993_s3 + $0x40] sm:$0xff] }
 0x1cd   :  { %v5321_v56 = vadd.f32 %v4083_v53, %v1499_v54 }
 0x1ce   :  { %v1576_v58 = vsel %vm1572_vm3, %v5319_v55, -inf }
 0x1cf   :  { %1577 = vmax.xlane.f32.xlu0 %v1576_v58  ;;  %v1573_v61 = vsel %vm1572_vm3, %v5321_v56, -inf  ;;  %v1486_v58 = vld [vmem:[%s5993_s3 + $0x58] sm:$0xff] }
 0x1d0   :  { %1574 = vmax.xlane.f32.xlu1 %v1573_v61  ;;  %v4092_v61 = vld [vmem:[%s5993_s3 + $0x108] sm:$0xff] }
 0x240   :  { %v4374_v6 = vpop.f32.mrb[0].mxu0  ;;  %v4381_v7 = vpop.f32.mrb[8].mxu1 }
 0x241   :  { %v1502_v9 = vmul.f32 %v4374_v6, %v1478_v3  ;;  %v1504_v10 = vmul.f32 %v4381_v7, %v1480_v4  ;;  %v636_v11 = vpop.f32.mrb[1].mxu0  ;;  %v719_v12 = vpop.f32.mrb[9].mxu1 }
 0x242   :  { %v1501_v14 = vmul.f32 %v1477_v5, %v636_v11  ;;  %v1503_v39 = vmul.f32 %v1479_v38, %v719_v12  ;;  %v1488_v5 = vld [vmem:[%s5993_s3 + $0x68] sm:$0xff]  ;;  %v4093_v11 = vld [vmem:[%s5993_s3 + $0x110] sm:$0xff] }
 0x243   :  { %v5348_v16 = vadd.f32 %v4086_v8, %v1502_v9  ;;  %v5354_v19 = vadd.f32 %v4088_v15, %v1504_v10  ;;  %v4094_v8 = vld [vmem:[%s5993_s3 + $0x118] sm:$0xff]  ;;  %v5438_v9 = vpop.permute.xlu0 %4870  ;;  %v1487_v10 = vld [vmem:[%s5993_s3 + $0x60] sm:$0xff]  ;;  %v1492_v38 = vld [vmem:[%s5993_s3 + $0x88] sm:$0xff] }
 0x244   :  { %v5350_v17 = vadd.f32 %v4085_v13, %v1501_v14  ;;  %v5393_v49 = vadd.f32 %v4087_v44, %v1503_v39 }
 0x245   :  { %v1582_v18 = vsel %vm1572_vm3, %v5348_v16, -inf  ;;  %v1588_v23 = vsel %vm1572_vm3, %v5354_v19, -inf }
 0x246   :  { %1583 = vmax.xlane.f32.xlu1 %v1582_v18  ;;  %v1579_v20 = vsel %vm1572_vm3, %v5350_v17, -inf  ;;  %v1585_v59 = vsel %vm1572_vm3, %v5393_v49, -inf  ;;  %v1490_v18 = vld [vmem:[%s5993_s3 + $0x78] sm:$0xff] }
 0x247   :  { %1580 = vmax.xlane.f32.xlu0 %v1579_v20 }
 0x248   :  { %v4388_v21 = vpop.f32.mrb[2].mxu0 }
 0x249   :  { %v802_v22 = vpop.f32.mrb[3].mxu0  ;;  %v1506_v45 = vmul.f32 %v4388_v21, %v1482_v41 }
 0x24a   :  { %1589 = vmax.xlane.f32.xlu1 %v1588_v23  ;;  %v1505_v46 = vmul.f32 %v1481_v43, %v802_v22  ;;  %v4096_v22 = vld [vmem:[%s5993_s3 + $0x128] sm:$0xff]  ;;  %v1489_v23 = vld [vmem:[%s5993_s3 + $0x70] sm:$0xff]  ;;  %v1491_v43 = vld [vmem:[%s5993_s3 + $0x80] sm:$0xff] }
 0x24b   :  { %v4395_v24 = vpop.f32.mrb[10].mxu1  ;;  %v5406_v54 = vadd.f32 %v4090_v50, %v1506_v45 }
 0x24c   :  { %v885_v25 = vpop.f32.mrb[11].mxu1  ;;  %v1508_v53 = vmul.f32 %v4395_v24, %v1484_v47  ;;  %v5413_v60 = vadd.f32 %v4089_v36, %v1505_v46  ;;  %v4095_v24 = vld [vmem:[%s5993_s3 + $0x120] sm:$0xff] }
 0x24d   :  { %v1507_v57 = vmul.f32 %v1483_v51, %v885_v25  ;;  %v1594_v2 = vsel %vm1572_vm3, %v5406_v54, -inf  ;;  %v1494_v51 = vld [vmem:[%s5993_s3 + $0x98] sm:$0xff] }
 0x24e   :  { %v5426_v3 = vadd.f32 %v4092_v61, %v1508_v53  ;;  %v1591_v6 = vsel %vm1572_vm3, %v5413_v60, -inf }
 0x24f   :  { %v5433_v7 = vadd.f32 %v4091_v0, %v1507_v57 }
 0x250   :  { %v1600_v13 = vsel %vm1572_vm3, %v5426_v3, -inf }
 0x251   :  { %v1597_v20 = vsel %vm1572_vm3, %v5433_v7, -inf }
 0x253   :  { %v4402_v26 = vpop.f32.mrb[4].mxu0 }
 0x254   :  { %v968_v27 = vpop.f32.mrb[5].mxu0  ;;  %v1510_v1 = vmul.f32 %v4402_v26, %v1486_v58 }
 0x255   :  { %v1509_v4 = vmul.f32 %v1485_v63, %v968_v27 }
 0x256   :  { %v5448_v14 = vadd.f32 %v4094_v8, %v1510_v1  ;;  %v1496_v1 = vld [vmem:[%s5993_s3 + $0xa8] sm:$0xff] }
 0x257   :  { %v4409_v28 = vpop.f32.mrb[12].mxu1  ;;  %v5455_v21 = vadd.f32 %v4093_v11, %v1509_v4 }
 0x258   :  { %v1051_v29 = vpop.f32.mrb[13].mxu1  ;;  %v1512_v12 = vmul.f32 %v4409_v28, %v1488_v5  ;;  %v1606_v27 = vsel %vm1572_vm3, %v5448_v14, -inf  ;;  %v1495_v5 = vld [vmem:[%s5993_s3 + $0xa0] sm:$0xff] }
 0x259   :  { %v1511_v15 = vmul.f32 %v1487_v10, %v1051_v29  ;;  %v1603_v39 = vsel %vm1572_vm3, %v5455_v21, -inf }
 0x25a   :  { %v5468_v28 = vadd.f32 %v4096_v22, %v1512_v12 }
 0x25b   :  { %4880 = vrot.lane.b32.xlu1 %v5227_v42, %s5043_s26  ;;  %v5475_v41 = vadd.f32 %v4095_v24, %v1511_v15 }
 0x25c   :  { %v1578_v25 = vpop.xlane.xlu0 %1577  ;;  %v1612_v46 = vsel %vm1572_vm3, %v5468_v28, -inf }
 0x25d   :  { %4875 = vrot.lane.b32.xlu0 %v5227_v42, %s5040_s23  ;;  %v1646_v44 = vsub.f32 %v5319_v55, %v1578_v25  ;;  %v1609_v36 = vsel %vm1572_vm3, %v5475_v41, -inf  ;;  %v4100_v55 = vld [vmem:[%s5993_s3 + $0x148] sm:$0xff]  ;;  %v1575_v63 = vpop.xlane.xlu1 %1574 }
 0x25f   :  { %v4416_v30 = vpop.f32.mrb[6].mxu0  ;;  %v1671_v57 = vmul.f32 1.442695, %v1646_v44 }
 0x260   :  { %v1134_v31 = vpop.f32.mrb[7].mxu0  ;;  %v1514_v26 = vmul.f32 %v4416_v30, %v1490_v18  ;;  %v4098_v30 = vld [vmem:[%s5993_s3 + $0x138] sm:$0xff]  ;;  %v4104_v18 = vld [vmem:[%s5993_s3 + $0x168] sm:$0xff] }
 0x261   :  { %v1513_v29 = vmul.f32 %v1489_v23, %v1134_v31  ;;  %v4097_v31 = vld [vmem:[%s5993_s3 + $0x130] sm:$0xff]  ;;  %4914 = vpow2.f32 %v1671_v57 }
 0x262   :  { %v5490_v47 = vadd.f32 %v4098_v30, %v1514_v26  ;;  %v1497_v26 = vld [vmem:[%s5993_s3 + $0xb0] sm:$0xff] }
 0x263   :  { %v5364_v32 = vpop.f32.mrb[14].mxu1  ;;  %v5498_v53 = vadd.f32 %v4097_v31, %v1513_v29 }
 0x264   :  { %v5366_v33 = vpop.f32.mrb[15].mxu1  ;;  %v1516_v45 = vmul.f32 %v5364_v32, %v1492_v38  ;;  %v1493_v32 = vld [vmem:[%s5993_s3 + $0x90] sm:$0xff] }
 0x265   :  { %v1515_v50 = vmul.f32 %v1491_v43, %v5366_v33  ;;  %v4099_v33 = vld [vmem:[%s5993_s3 + $0x140] sm:$0xff]  ;;  %v4105_v43 = vld [vmem:[%s5993_s3 + $0x170] sm:$0xff] }
 0x266   :  { %v5512_v61 = vadd.f32 %v4100_v55, %v1516_v45 }
 0x267   :  { %v5520_v4 = vadd.f32 %v4099_v33, %v1515_v50 }
 0x268   :  { %v1624_v10 = vsel %vm1572_vm3, %v5512_v61, -inf }
 0x26b   :  { %v5368_v34 = vpop.f32.mrb[8].mxu0 }
 0x26c   :  { %v5370_v35 = vpop.f32.mrb[9].mxu0  ;;  %v1518_v58 = vmul.f32 %v5368_v34, %v1494_v51  ;;  %v4102_v34 = vld [vmem:[%s5993_s3 + $0x158] sm:$0xff] }
 0x26d   :  { %v1517_v0 = vmul.f32 %v1493_v32, %v5370_v35  ;;  %v4101_v35 = vld [vmem:[%s5993_s3 + $0x150] sm:$0xff] }
 0x26e   :  { %v5535_v11 = vadd.f32 %v4102_v34, %v1518_v58 }
 0x26f   :  { %v5372_v37 = vpop.f32.mrb[16].mxu1  ;;  %v5540_v15 = vadd.f32 %v4101_v35, %v1517_v0 }
 0x270   :  { %v5377_v40 = vpop.f32.mrb[17].mxu1  ;;  %v1520_v8 = vmul.f32 %v5372_v37, %v1496_v1  ;;  %v4103_v37 = vld [vmem:[%s5993_s3 + $0x160] sm:$0xff] }
 0x271   :  { %v1519_v12 = vmul.f32 %v1495_v5, %v5377_v40  ;;  %v1627_v24 = vsel %vm1572_vm3, %v5540_v15, -inf }
 0x272   :  { %v5553_v22 = vadd.f32 %v4104_v18, %v1520_v8 }
 0x273   :  { %v5558_v25 = vadd.f32 %v4103_v37, %v1519_v12 }
 0x274   :  { %v1636_v29 = vsel %vm1572_vm3, %v5553_v22, -inf }
 0x277   :  { %v5391_v48 = vpop.f32.mrb[10].mxu0 }
 0x278   :  { %v5401_v52 = vpop.f32.mrb[11].mxu0 }
 0x279   :  { %v1521_v38 = vmul.f32 %v1497_v26, %v5401_v52 }
 0x27b   :  { %v5582_v45 = vadd.f32 %v4105_v43, %v1521_v38 }
 0x27c   :  { %1586 = vmax.xlane.f32.xlu0 %v1585_v59  ;;  %v1618_v59 = vsel %vm1572_vm3, %v5490_v47, -inf }
 0x27d   :  { %v1639_v52 = vsel %vm1572_vm3, %v5582_v45, -inf }
 0x27f   :  { %1595 = vmax.xlane.f32.xlu1 %v1594_v2  ;;  %v1615_v2 = vsel %vm1572_vm3, %v5498_v53, -inf }
 0x280   :  { %1592 = vmax.xlane.f32.xlu0 %v1591_v6  ;;  %v1645_v6 = vsub.f32 %v5321_v56, %v1575_v63  ;;  %v1498_v56 = vld [vmem:[%s5993_s3 + $0xb8] sm:$0xff] }
 0x281   :  { %v1522_v23 = vmul.f32 %v5391_v48, %v1498_v56  ;;  %v5568_v48 = vpop.eup %4914 }
 0x282   :  { %v1669_v40 = vmul.f32 1.442695, %v1645_v6  ;;  %v1720_v31 = vsel %vm1572_vm3, %v5568_v48, 0.0 }
 0x283   :  { %1601 = vmax.xlane.f32.xlu1 %v1600_v13  ;;  %v1621_v13 = vsel %vm1572_vm3, %v5520_v4, -inf }
 0x284   :  { %1598 = vmax.xlane.f32.xlu0 %v1597_v20  ;;  %v1630_v20 = vsel %vm1572_vm3, %v5535_v11, -inf  ;;  %4916 = vpow2.f32 %v1669_v40 }
 0x287   :  { %1607 = vmax.xlane.f32.xlu1 %v1606_v27  ;;  %v4106_v27 = vld [vmem:[%s5993_s3 + $0x178] sm:$0xff] }
 0x288   :  { %1604 = vmax.xlane.f32.xlu0 %v1603_v39  ;;  %v1633_v39 = vsel %vm1572_vm3, %v5558_v25, -inf  ;;  %v5573_v30 = vadd.f32 %v4106_v27, %v1522_v23 }
 0x28a   :  { %v1642_v44 = vsel %vm1572_vm3, %v5573_v30, -inf }
 0x28b   :  { %1613 = vmax.xlane.f32.xlu1 %v1612_v46 }
 0x28c   :  { %1610 = vmax.xlane.f32.xlu0 %v1609_v36 }
 0x28e   :  { %v5586_v46 = vpop.eup %4916 }
 0x28f   :  { %1619 = vmax.xlane.f32.xlu1 %v1618_v59  ;;  %v1717_v50 = vsel %vm1572_vm3, %v5586_v46, 0.0 }
 0x290   :  { %1616 = vmax.xlane.f32.xlu0 %v1615_v2 }
 0x293   :  { %1625 = vmax.xlane.f32.xlu1 %v1624_v10 }
 0x294   :  { %1622 = vmax.xlane.f32.xlu0 %v1621_v13 }
 0x297   :  { %1631 = vmax.xlane.f32.xlu1 %v1630_v20 }
 0x298   :  { %1628 = vmax.xlane.f32.xlu0 %v1627_v24 }
 0x29b   :  { %1637 = vmax.xlane.f32.xlu1 %v1636_v29 }
 0x29c   :  { %1634 = vmax.xlane.f32.xlu0 %v1633_v39 }
 0x29f   :  { %1721 = vadd.xlane.f32.xlu1 %v1720_v31 }
 0x2a0   :  { %1643 = vmax.xlane.f32.xlu0 %v1642_v44 }
 0x2a4   :  { %1640 = vmax.xlane.f32.xlu0 %v1639_v52 }
 0x2a8   :  { %1718 = vadd.xlane.f32.xlu0 %v1717_v50 }
 0x2b0   :  { %4890 = vrot.lane.b32.xlu1 %v5227_v42, %s5045_s28 }
 0x2be   :  { %4885 = vrot.lane.b32.xlu0 %v5227_v42, %s5042_s25 }
 0x2d3   :  { %v1584_v51 = vpop.xlane.xlu1 %1583 }
 0x2d4   :  { %v1648_v36 = vsub.f32 %v5348_v16, %v1584_v51  ;;  %v1581_v55 = vpop.xlane.xlu0 %1580 }
 0x2d5   :  { %v1647_v33 = vsub.f32 %v5350_v17, %v1581_v55 }
 0x2d6   :  { %v1675_v32 = vmul.f32 1.442695, %v1648_v36 }
 0x2d7   :  { %v1590_v57 = vpop.xlane.xlu1 %1589  ;;  %v1673_v1 = vmul.f32 1.442695, %v1647_v33 }
 0x2d8   :  { %4918 = vpow2.f32 %v1675_v32  ;;  %v1650_v58 = vsub.f32 %v5354_v19, %v1590_v57  ;;  %v4876_v59 = vpop.permute.xlu0 %4875 }
 0x2d9   :  { %v4878_v63 = vunpack.i.h.bf16 %v4876_v59  ;;  %v4877_v0 = vunpack.i.l.bf16 %v4876_v59 }
 0x2da   :  { %v1679_v2 = vmul.f32 1.442695, %v1650_v58 }
 0x2db   :  { %v5597_v34 = vpack.c.bf16 %v4878_v63, %v4877_v0  ;;  %v5612_v8 = vpop.permute.xlu1 %4880 }
 0x2dc   :  { %4920 = vpow2.f32 %v1679_v2 }
 0x2dd   :  { %4721 = vmatprep.subr.bf16.mxu0 %v5597_v34  ;;  %4922 = vpow2.f32 %v1673_v1 }
 0x2e2   :  { %v5600_v16 = vpop.eup %4918 }
 0x2e3   :  { %v1726_v17 = vsel %vm1572_vm3, %v5600_v16, 0.0 }
 0x2e4   :  { %1727 = vadd.xlane.f32.xlu1 %v1726_v17 }
 0x2e6   :  { %v5604_v5 = vpop.eup %4920 }
 0x2e7   :  { %v1732_v19 = vsel %vm1572_vm3, %v5604_v5, 0.0  ;;  %v5608_v35 = vpop.eup %4922 }
 0x2e8   :  { %1733 = vadd.xlane.f32.xlu1 %v1732_v19  ;;  %v1723_v6 = vsel %vm1572_vm3, %v5608_v35, 0.0 }
 0x2ec   :  { %1724 = vadd.xlane.f32.xlu1 %v1723_v6 }
 0x309   :  { %v1587_v10 = vpop.xlane.xlu0 %1586 }
 0x30a   :  { %v1649_v12 = vsub.f32 %v5393_v49, %v1587_v10 }
 0x30c   :  { %v1677_v13 = vmul.f32 1.442695, %v1649_v12  ;;  %v1596_v18 = vpop.xlane.xlu1 %1595 }
 0x30d   :  { %v1652_v56 = vsub.f32 %v5406_v54, %v1596_v18  ;;  %v1593_v37 = vpop.xlane.xlu0 %1592 }
 0x30e   :  { %4924 = vpow2.f32 %v1677_v13  ;;  %v1651_v20 = vsub.f32 %v5413_v60, %v1593_v37 }
 0x30f   :  { %v1683_v40 = vmul.f32 1.442695, %v1652_v56 }
 0x310   :  { %v1602_v23 = vpop.xlane.xlu1 %1601  ;;  %v1681_v27 = vmul.f32 1.442695, %v1651_v20 }
 0x311   :  { %4926 = vpow2.f32 %v1683_v40  ;;  %v1654_v24 = vsub.f32 %v5426_v3, %v1602_v23  ;;  %v1599_v26 = vpop.xlane.xlu0 %1598 }
 0x312   :  { %v1653_v38 = vsub.f32 %v5433_v7, %v1599_v26 }
 0x313   :  { %v1687_v29 = vmul.f32 1.442695, %v1654_v24 }
 0x314   :  { %v1608_v39 = vpop.xlane.xlu1 %1607  ;;  %v1685_v54 = vmul.f32 1.442695, %v1653_v38 }
 0x315   :  { %4928 = vpow2.f32 %v1687_v29  ;;  %v1605_v49 = vpop.xlane.xlu0 %1604  ;;  %v1656_v31 = vsub.f32 %v5448_v14, %v1608_v39 }
 0x316   :  { %v1655_v43 = vsub.f32 %v5455_v21, %v1605_v49  ;;  %4930 = vpow2.f32 %v1681_v27 }
 0x317   :  { %v1691_v51 = vmul.f32 1.442695, %v1656_v31 }
 0x318   :  { %v5621_v44 = vpop.eup %4924  ;;  %v1689_v60 = vmul.f32 1.442695, %v1655_v43  ;;  %v1614_v52 = vpop.xlane.xlu1 %1613 }
 0x319   :  { %v1611_v50 = vpop.xlane.xlu0 %1610  ;;  %v1729_v3 = vsel %vm1572_vm3, %v5621_v44, 0.0  ;;  %v1658_v21 = vsub.f32 %v5468_v28, %v1614_v52 }
 0x31a   :  { %4932 = vpow2.f32 %v1689_v60  ;;  %1730 = vadd.xlane.f32.xlu0 %v1729_v3  ;;  %v1657_v58 = vsub.f32 %v5475_v41, %v1611_v50 }
 0x31b   :  { %v5625_v7 = vpop.eup %4926  ;;  %4934 = vpow2.f32 %v1685_v54  ;;  %v1695_v57 = vmul.f32 1.442695, %v1658_v21 }
 0x31c   :  { %v1620_v36 = vpop.xlane.xlu1 %1619  ;;  %v1738_v14 = vsel %vm1572_vm3, %v5625_v7, 0.0  ;;  %4936 = vpow2.f32 %v1691_v51 }
 0x31d   :  { %v1660_v55 = vsub.f32 %v5490_v47, %v1620_v36  ;;  %v1617_v32 = vpop.xlane.xlu0 %1616  ;;  %1739 = vadd.xlane.f32.xlu1 %v1738_v14  ;;  %v1693_v47 = vmul.f32 1.442695, %v1657_v58 }
 0x31e   :  { %v1659_v17 = vsub.f32 %v5498_v53, %v1617_v32 }
 0x31f   :  { %v5631_v33 = vpop.eup %4928  ;;  %v1699_v59 = vmul.f32 1.442695, %v1660_v55 }
 0x320   :  { %v1626_v63 = vpop.xlane.xlu1 %1625  ;;  %v1744_v0 = vsel %vm1572_vm3, %v5631_v33, 0.0  ;;  %v5636_v28 = vpop.eup %4930  ;;  %v1697_v53 = vmul.f32 1.442695, %v1659_v17 }
 0x321   :  { %4938 = vpow2.f32 %v1699_v59  ;;  %v1662_v1 = vsub.f32 %v5512_v61, %v1626_v63  ;;  %v1623_v2 = vpop.xlane.xlu0 %1622  ;;  %1745 = vadd.xlane.f32.xlu1 %v1744_v0  ;;  %v1735_v10 = vsel %vm1572_vm3, %v5636_v28, 0.0 }
 0x322   :  { %4940 = vpow2.f32 %v1695_v57  ;;  %v1661_v56 = vsub.f32 %v5520_v4, %v1623_v2 }
 0x323   :  { %v1703_v19 = vmul.f32 1.442695, %v1662_v1 }
 0x324   :  { %v5640_v6 = vpop.eup %4932  ;;  %v1632_v41 = vpop.xlane.xlu1 %1631  ;;  %v1701_v26 = vmul.f32 1.442695, %v1661_v56 }
 0x325   :  { %v5644_v12 = vpop.eup %4934  ;;  %4942 = vpow2.f32 %v1703_v19  ;;  %v1664_v13 = vsub.f32 %v5535_v11, %v1632_v41  ;;  %v1629_v18 = vpop.xlane.xlu0 %1628  ;;  %1736 = vadd.xlane.f32.xlu1 %v1735_v10  ;;  %v1747_v61 = vsel %vm1572_vm3, %v5640_v6, 0.0  ;;  %v4873_v41 = vunpack.i.h.bf16 %v5438_v9 }
 0x326   :  { %1748 = vadd.xlane.f32.xlu0 %v1747_v61  ;;  %4944 = vpow2.f32 %v1693_v47  ;;  %v1741_v20 = vsel %vm1572_vm3, %v5644_v12, 0.0  ;;  %v5652_v23 = vpop.eup %4936  ;;  %v1663_v4 = vsub.f32 %v5540_v15, %v1629_v18 }
 0x327   :  { %v1707_v37 = vmul.f32 1.442695, %v1664_v13  ;;  %v1750_v39 = vsel %vm1572_vm3, %v5652_v23, 0.0 }
 0x328   :  { %v1638_v40 = vpop.xlane.xlu1 %1637  ;;  %v1705_v15 = vmul.f32 1.442695, %v1663_v4 }
 0x329   :  { %4946 = vpow2.f32 %v1707_v37  ;;  %v1666_v11 = vsub.f32 %v5553_v22, %v1638_v40  ;;  %1742 = vadd.xlane.f32.xlu1 %v1741_v20  ;;  %v1635_v24 = vpop.xlane.xlu0 %1634 }
 0x32a   :  { %4948 = vpow2.f32 %v1697_v53  ;;  %v1665_v54 = vsub.f32 %v5558_v25, %v1635_v24 }
 0x32b   :  { %v5655_v27 = vpop.eup %4938  ;;  %v1711_v29 = vmul.f32 1.442695, %v1666_v11 }
 0x32c   :  { %v1722_v38 = vpop.xlane.xlu1 %1721  ;;  %v1762_v49 = vsel %vm1572_vm3, %v5655_v27, 0.0  ;;  %v5662_v43 = vpop.eup %4940  ;;  %v1709_v51 = vmul.f32 1.442695, %v1665_v54 }
 0x32d   :  { %4950 = vpow2.f32 %v1711_v29  ;;  %1751 = vadd.xlane.f32.xlu1 %v1750_v39  ;;  %1763 = vadd.xlane.f32.xlu0 %v1762_v49  ;;  %v1644_v22 = vpop.xlane.xlu0 %1643  ;;  %v1756_v60 = vsel %vm1572_vm3, %v5662_v43, 0.0  ;;  %v4882_v39 = vunpack.i.l.bf16 %v5612_v8 }
 0x32e   :  { %4952 = vpow2.f32 %v1701_v26 }
 0x32f   :  { %v5665_v31 = vpop.eup %4942  ;;  %4954 = vrcp.f32 %v1722_v38 }
 0x330   :  { %v1768_v52 = vsel %vm1572_vm3, %v5665_v31, 0.0  ;;  %v5671_v50 = vpop.eup %4944  ;;  %4956 = vpow2.f32 %v1705_v15 }
 0x331   :  { %1757 = vadd.xlane.f32.xlu1 %v1756_v60  ;;  %1769 = vadd.xlane.f32.xlu0 %v1768_v52  ;;  %v1641_v3 = vpop.xlane.xlu0 %1640  ;;  %v1753_v25 = vsel %vm1572_vm3, %v5671_v50, 0.0  ;;  %4958 = vpow2.f32 %v1709_v51 }
 0x332   :  { %v1667_v61 = vsub.f32 %v5582_v45, %v1641_v3 }
 0x333   :  { %v5673_v21 = vpop.eup %4946 }
 0x334   :  { %v1774_v36 = vsel %vm1572_vm3, %v5673_v21, 0.0  ;;  %v5679_v14 = vpop.eup %4948  ;;  %v1713_v53 = vmul.f32 1.442695, %v1667_v61 }
 0x335   :  { %1754 = vadd.xlane.f32.xlu1 %v1753_v25  ;;  %1775 = vadd.xlane.f32.xlu0 %v1774_v36  ;;  %v1719_v55 = vpop.xlane.xlu0 %1718  ;;  %v1759_v58 = vsel %vm1572_vm3, %v5679_v14, 0.0 }
 0x336   :  { %4960 = vrcp.f32 %v1719_v55 }
 0x337   :  { %v5681_v32 = vpop.eup %4950 }
 0x338   :  { %v5683_v57 = vpop.eup %4952  ;;  %v1780_v59 = vsel %vm1572_vm3, %v5681_v32, 0.0 }
 0x339   :  { %v4955_v63 = vpop.eup %4954  ;;  %1760 = vadd.xlane.f32.xlu1 %v1759_v58  ;;  %1781 = vadd.xlane.f32.xlu0 %v1780_v59  ;;  %v1765_v1 = vsel %vm1572_vm3, %v5683_v57, 0.0 }
 0x33a   :  { %v1814_v0 = vmul.f32 %v4955_v63, %v5568_v48  ;;  %v5696_v2 = vpop.eup %4956  ;;  %v4872_v48 = vunpack.i.l.bf16 %v5438_v9  ;;  %v1668_v9 = vsub.f32 %v5573_v30, %v1644_v22  ;;  %v4886_v22 = vpop.permute.xlu0 %4885 }
 0x33b   :  { %v5698_v47 = vpop.eup %4958  ;;  %v1771_v17 = vsel %vm1572_vm3, %v5696_v2, 0.0  ;;  %v4888_v60 = vunpack.i.h.bf16 %v4886_v22  ;;  %v4887_v52 = vunpack.i.l.bf16 %v4886_v22 }
 0x33c   :  { %1838 = vst.msk [vmem:[%s5998_s8 + $0x8] sm:$0xff] %vm1572_vm3, %v1814_v0  ;;  %v1777_v13 = vsel %vm1572_vm3, %v5698_v47, 0.0  ;;  %v4716_v18 = vpack.c.bf16 %v4873_v41, %v4872_v48 }
 0x33d   :  { %1766 = vadd.xlane.f32.xlu1 %v1765_v1 }
 0x340   :  { %v4961_v19 = vpop.eup %4960 }
 0x341   :  { %1772 = vadd.xlane.f32.xlu1 %v1771_v17  ;;  %v1813_v10 = vmul.f32 %v4961_v19, %v5586_v46  ;;  %v1715_v46 = vmul.f32 1.442695, %v1668_v9 }
 0x343   :  { %1837 = vst.msk [vmem:[%s5998_s8] sm:$0xff] %vm1572_vm3, %v1813_v10  ;;  %4449 = vmatprep.mubr.msk.f32.mxu1 %vm1572_vm3, %v1813_v10  ;;  %4962 = vpow2.f32 %v1715_v46 }
 0x344   :  { %4450 = vmatmul.mubr.msk.f32.vlgmr.msra.gmra.mrb[18].mxu1 %vm1572_vm3, %v1814_v0  ;;  %4964 = vpow2.f32 %v1713_v53 }
 0x345   :  { %1778 = vadd.xlane.f32.xlu1 %v1777_v13  ;;  %4711 = vmatpush3.bf16.msra.mxu1 %v5327_v62  ;;  %v5724_v62 = vpop.permute.xlu1 %4890 }
 0x346   :  { %4717 = vmatprep.subr.bf16.mxu1 %v4716_v18  ;;  %v4892_v1 = vunpack.i.l.bf16 %v5724_v62 }
 0x34d   :  { %v5722_v56 = vpop.eup %4962 }
 0x34e   :  { %v1786_v37 = vsel %vm1572_vm3, %v5722_v56, 0.0  ;;  %v5728_v11 = vpop.eup %4964 }
 0x34f   :  { %4895 = vrot.lane.b32.xlu0 %v5227_v42, %s5044_s27  ;;  %v1783_v26 = vsel %vm1572_vm3, %v5728_v11, 0.0 }
 0x356   :  { %4900 = vrot.lane.b32.xlu1 %v5227_v42, %s5047_s30 }
 0x35a   :  { %4905 = vrot.lane.b32.xlu1 %v5227_v42, %s5046_s29 }
 0x36e   :  { %1787 = vadd.xlane.f32.xlu0 %v1786_v37 }
 0x371   :  { %v1728_v40 = vpop.xlane.xlu1 %1727 }
 0x372   :  { %4966 = vrcp.f32 %v1728_v40 }
 0x375   :  { %v1734_v30 = vpop.xlane.xlu1 %1733 }
 0x376   :  { %4968 = vrcp.f32 %v1734_v30 }
 0x379   :  { %v1725_v20 = vpop.xlane.xlu1 %1724 }
 0x37a   :  { %4970 = vrcp.f32 %v1725_v20 }
 0x37c   :  { %v4967_v24 = vpop.eup %4966 }
 0x37d   :  { %v1816_v45 = vmul.f32 %v4967_v24, %v5600_v16  ;;  %v4883_v16 = vunpack.i.h.bf16 %v5612_v8 }
 0x37e   :  { %1784 = vadd.xlane.f32.xlu1 %v1783_v26 }
 0x37f   :  { %1840 = vst.msk [vmem:[%s5998_s8 + $0x18] sm:$0xff] %vm1572_vm3, %v1816_v45 }
 0x380   :  { %v4969_v4 = vpop.eup %4968 }
 0x381   :  { %v1818_v29 = vmul.f32 %v4969_v4, %v5604_v5  ;;  %v4724_v5 = vpack.c.bf16 %v4883_v16, %v4882_v39 }
 0x383   :  { %1842 = vst.msk [vmem:[%s5998_s8 + $0x28] sm:$0xff] %vm1572_vm3, %v1818_v29 }
 0x384   :  { %v4971_v38 = vpop.eup %4970 }
 0x385   :  { %v1815_v49 = vmul.f32 %v4971_v38, %v5608_v35 }
 0x387   :  { %1839 = vst.msk [vmem:[%s5998_s8 + $0x10] sm:$0xff] %vm1572_vm3, %v1815_v49  ;;  %4456 = vmatprep.mubr.msk.f32.mxu1 %vm1572_vm3, %v1815_v49 }
 0x388   :  { %4457 = vmatmul.mubr.msk.f32.vlgmr.msra.gmra.mrb[20].mxu1 %vm1572_vm3, %v1816_v45 }
 0x389   :  { %4719 = vmatpush3.bf16.msra.mxu1 %v4716_v18 }
 0x38a   :  { %4725 = vmatprep.subr.bf16.mxu1 %v4724_v5 }
 0x38f   :  { %4910 = vrot.lane.b32.xlu1 %v5227_v42, %s5048_s11  ;;  %v4728_v42 = vpack.c.bf16 %v4888_v60, %v4887_v52 }
 0x3a7   :  { %v1731_v54 = vpop.xlane.xlu0 %1730 }
 0x3a8   :  { %4972 = vrcp.f32 %v1731_v54 }
 0x3aa   :  { %v1740_v8 = vpop.xlane.xlu1 %1739 }
 0x3ab   :  { %4974 = vrcp.f32 %v1740_v8 }
 0x3ae   :  { %v1746_v35 = vpop.xlane.xlu1 %1745 }
 0x3af   :  { %4976 = vrcp.f32 %v1746_v35 }
 0x3b2   :  { %v4973_v15 = vpop.eup %4972  ;;  %v1737_v3 = vpop.xlane.xlu1 %1736 }
 0x3b3   :  { %4978 = vrcp.f32 %v1737_v3  ;;  %v1749_v51 = vpop.xlane.xlu0 %1748  ;;  %v1817_v25 = vmul.f32 %v4973_v15, %v5621_v44 }
 0x3b4   :  { %4980 = vrcp.f32 %v1749_v51 }
 0x3b5   :  { %v4975_v36 = vpop.eup %4974  ;;  %1841 = vst.msk [vmem:[%s5998_s8 + $0x20] sm:$0xff] %vm1572_vm3, %v1817_v25  ;;  %4463 = vmatprep.mubr.msk.f32.mxu0 %vm1572_vm3, %v1817_v25 }
 0x3b6   :  { %v1820_v55 = vmul.f32 %v4975_v36, %v5625_v7  ;;  %v1743_v58 = vpop.xlane.xlu1 %1742  ;;  %4464 = vmatmul.mubr.msk.f32.vlgmr.msra.gmra.mrb[12].mxu0 %vm1572_vm3, %v1818_v29  ;;  %v4131_v36 = vld [vmem:[%s5994_s4 + $0x8] sm:$0xff] }
 0x3b7   :  { %4982 = vrcp.f32 %v1743_v58  ;;  %4723 = vmatpush3.bf16.msra.mxu0 %v5597_v34  ;;  %v4893_v34 = vunpack.i.h.bf16 %v5724_v62 }
 0x3b8   :  { %1844 = vst.msk [vmem:[%s5998_s8 + $0x38] sm:$0xff] %vm1572_vm3, %v1820_v55  ;;  %4729 = vmatprep.subr.bf16.mxu0 %v4728_v42 }
 0x3b9   :  { %v4977_v44 = vpop.eup %4976  ;;  %v4732_v13 = vpack.c.bf16 %v4893_v34, %v4892_v1 }
 0x3ba   :  { %v1822_v59 = vmul.f32 %v4977_v44, %v5631_v33  ;;  %v1752_v63 = vpop.xlane.xlu1 %1751  ;;  %v1764_v0 = vpop.xlane.xlu0 %1763 }
 0x3bb   :  { %4984 = vrcp.f32 %v1752_v63 }
 0x3bc   :  { %1846 = vst.msk [vmem:[%s5998_s8 + $0x48] sm:$0xff] %vm1572_vm3, %v1822_v59  ;;  %4986 = vrcp.f32 %v1764_v0 }
 0x3bd   :  { %v4979_v7 = vpop.eup %4978 }
 0x3be   :  { %v4981_v17 = vpop.eup %4980  ;;  %v1758_v19 = vpop.xlane.xlu1 %1757  ;;  %v1819_v48 = vmul.f32 %v4979_v7, %v5636_v28 }
 0x3bf   :  { %v1770_v41 = vpop.xlane.xlu0 %1769  ;;  %4988 = vrcp.f32 %v1758_v19  ;;  %v1823_v33 = vmul.f32 %v4981_v17, %v5640_v6 }
 0x3c0   :  { %4990 = vrcp.f32 %v1770_v41  ;;  %1843 = vst.msk [vmem:[%s5998_s8 + $0x30] sm:$0xff] %vm1572_vm3, %v1819_v48  ;;  %4470 = vmatprep.mubr.msk.f32.mxu1 %vm1572_vm3, %v1819_v48  ;;  %v4136_v41 = vld [vmem:[%s5994_s4 + $0x10] sm:$0xff] }
 0x3c1   :  { %v4983_v10 = vpop.eup %4982  ;;  %4471 = vmatmul.mubr.msk.f32.vlgmr.msra.gmra.mrb[22].mxu1 %vm1572_vm3, %v1820_v55  ;;  %1847 = vst.msk [vmem:[%s5998_s8 + $0x50] sm:$0xff] %vm1572_vm3, %v1823_v33 }
 0x3c2   :  { %4727 = vmatpush3.bf16.msra.mxu1 %v4724_v5  ;;  %v1755_v28 = vpop.xlane.xlu1 %1754  ;;  %4484 = vmatprep.mubr.msk.f32.mxu1 %vm1572_vm3, %v1823_v33  ;;  %v1821_v18 = vmul.f32 %v4983_v10, %v5644_v12  ;;  %v4142_v10 = vld [vmem:[%s5994_s4 + $0x20] sm:$0xff] }
 0x3c3   :  { %v1776_v6 = vpop.xlane.xlu0 %1775  ;;  %4992 = vrcp.f32 %v1755_v28  ;;  %4733 = vmatprep.subr.bf16.mxu1 %v4732_v13 }
 0x3c4   :  { %4994 = vrcp.f32 %v1776_v6  ;;  %1845 = vst.msk [vmem:[%s5998_s8 + $0x40] sm:$0xff] %vm1572_vm3, %v1821_v18  ;;  %4477 = vmatprep.mubr.msk.f32.mxu0 %vm1572_vm3, %v1821_v18  ;;  %v4145_v6 = vld [vmem:[%s5994_s4 + $0x28] sm:$0xff] }
 0x3c5   :  { %v4985_v9 = vpop.eup %4984  ;;  %4478 = vmatmul.mubr.msk.f32.vlgmr.msra.gmra.mrb[14].mxu0 %vm1572_vm3, %v1822_v59 }
 0x3c6   :  { %v4987_v46 = vpop.eup %4986  ;;  %v1824_v61 = vmul.f32 %v4985_v9, %v5652_v23  ;;  %4731 = vmatpush3.bf16.msra.mxu0 %v4728_v42  ;;  %v1761_v53 = vpop.xlane.xlu1 %1760 }
 0x3c7   :  { %v1782_v62 = vpop.xlane.xlu0 %1781  ;;  %v1828_v12 = vmul.f32 %v4987_v46, %v5655_v27  ;;  %4996 = vrcp.f32 %v1761_v53  ;;  %v4148_v53 = vld [vmem:[%s5994_s4 + $0x30] sm:$0xff] }
 0x3c8   :  { %1848 = vst.msk [vmem:[%s5998_s8 + $0x58] sm:$0xff] %vm1572_vm3, %v1824_v61  ;;  %4998 = vrcp.f32 %v1782_v62  ;;  %4485 = vmatmul.mubr.msk.f32.vlgmr.msra.gmra.mrb[24].mxu1 %vm1572_vm3, %v1824_v61 }
 0x3c9   :  { %v4989_v37 = vpop.eup %4988  ;;  %1852 = vst.msk [vmem:[%s5998_s8 + $0x78] sm:$0xff] %vm1572_vm3, %v1828_v12  ;;  %4735 = vmatpush3.bf16.msra.mxu1 %v4732_v13 }
 0x3ca   :  { %v4991_v23 = vpop.eup %4990  ;;  %v1826_v40 = vmul.f32 %v4989_v37, %v5662_v43  ;;  %v1767_v27 = vpop.xlane.xlu1 %1766  ;;  %v4151_v37 = vld [vmem:[%s5994_s4 + $0x38] sm:$0xff] }
 0x3cb   :  { %v4896_v30 = vpop.permute.xlu0 %4895  ;;  %v1830_v20 = vmul.f32 %v4991_v23, %v5665_v31  ;;  %5000 = vrcp.f32 %v1767_v27 }
 0x3cc   :  { %v4898_v24 = vunpack.i.h.bf16 %v4896_v30  ;;  %v4897_v45 = vunpack.i.l.bf16 %v4896_v30  ;;  %1850 = vst.msk [vmem:[%s5998_s8 + $0x68] sm:$0xff] %vm1572_vm3, %v1826_v40 }
 0x3cd   :  { %v4993_v26 = vpop.eup %4992  ;;  %1854 = vst.msk [vmem:[%s5998_s8 + $0x88] sm:$0xff] %vm1572_vm3, %v1830_v20 }
 0x3ce   :  { %v4736_v4 = vpack.c.bf16 %v4898_v24, %v4897_v45  ;;  %v4995_v43 = vpop.eup %4994  ;;  %v1773_v29 = vpop.xlane.xlu1 %1772  ;;  %v1825_v38 = vmul.f32 %v4993_v26, %v5671_v50 }
 0x3cf   :  { %v1832_v31 = vmul.f32 %v4995_v43, %v5673_v21  ;;  %5002 = vrcp.f32 %v1773_v29  ;;  %v4160_v29 = vld [vmem:[%s5994_s4 + $0x50] sm:$0xff] }
 0x3d0   :  { %4737 = vmatprep.subr.bf16.mxu0 %v4736_v4  ;;  %1849 = vst.msk [vmem:[%s5998_s8 + $0x60] sm:$0xff] %vm1572_vm3, %v1825_v38  ;;  %4491 = vmatprep.mubr.msk.f32.mxu0 %vm1572_vm3, %v1825_v38  ;;  %v4163_v38 = vld [vmem:[%s5994_s4 + $0x58] sm:$0xff] }
 0x3d1   :  { %v4997_v16 = vpop.eup %4996  ;;  %1856 = vst.msk [vmem:[%s5998_s8 + $0x98] sm:$0xff] %vm1572_vm3, %v1832_v31  ;;  %4492 = vmatmul.mubr.msk.f32.vlgmr.msra.gmra.mrb[16].mxu0 %vm1572_vm3, %v1826_v40 }
 0x3d2   :  { %v4999_v50 = vpop.eup %4998  ;;  %4739 = vmatpush3.bf16.msra.mxu0 %v4736_v4  ;;  %v1779_v21 = vpop.xlane.xlu1 %1778  ;;  %v1827_v39 = vmul.f32 %v4997_v16, %v5679_v14  ;;  %v4157_v4 = vld [vmem:[%s5994_s4 + $0x48] sm:$0xff] }
 0x3d3   :  { %v1834_v49 = vmul.f32 %v4999_v50, %v5681_v32  ;;  %5004 = vrcp.f32 %v1779_v21  ;;  %v3849_v50 = vlaneseq }
 0x3d4   :  { %1851 = vst.msk [vmem:[%s5998_s8 + $0x70] sm:$0xff] %vm1572_vm3, %v1827_v39  ;;  %4498 = vmatprep.mubr.msk.f32.mxu1 %vm1572_vm3, %v1827_v39 }
 0x3d5   :  { %v5001_v5 = vpop.eup %5000  ;;  %1858 = vst.msk [vmem:[%s5998_s8 + $0xa8] sm:$0xff] %vm1572_vm3, %v1834_v49  ;;  %4499 = vmatmul.mubr.msk.f32.vlgmr.msra.gmra.mrb[26].mxu1 %vm1572_vm3, %v1828_v12  ;;  %v5931_v21 = vshrl.u32 %v3849_v50, 7 }
 0x3d6   :  { %v4901_v22 = vpop.permute.xlu1 %4900  ;;  %v1829_v14 = vmul.f32 %v5001_v5, %v5683_v57 }
 0x3d7   :  { %v4903_v32 = vunpack.i.h.bf16 %v4901_v22  ;;  %v4902_v54 = vunpack.i.l.bf16 %v4901_v22  ;;  %v3851_v39 = vsub.s32 0, %v5931_v21 }
 0x3d8   :  { %1853 = vst.msk [vmem:[%s5998_s8 + $0x80] sm:$0xff] %vm1572_vm3, %v1829_v14  ;;  %4505 = vmatprep.mubr.msk.f32.mxu0 %vm1572_vm3, %v1829_v14 }
 0x3d9   :  { %v5003_v8 = vpop.eup %5002  ;;  %v4740_v35 = vpack.c.bf16 %v4903_v32, %v4902_v54  ;;  %4506 = vmatmul.mubr.msk.f32.vlgmr.msra.gmra.mrb[18].mxu0 %vm1572_vm3, %v1830_v20  ;;  %v4154_v20 = vld [vmem:[%s5994_s4 + $0x40] sm:$0xff] }
 0x3da   :  { %v4906_v15 = vpop.permute.xlu1 %4905  ;;  %v1831_v60 = vmul.f32 %v5003_v8, %v5696_v2  ;;  %v2834_v2 = vld [vmem:[%s5994_s4] sm:$0xff] }
 0x3db   :  { %v4908_v52 = vunpack.i.h.bf16 %v4906_v15  ;;  %v4907_v3 = vunpack.i.l.bf16 %v4906_v15  ;;  %4741 = vmatprep.subr.bf16.mxu1 %v4740_v35 }
 0x3dc   :  { %4743 = vmatpush3.bf16.msra.mxu1 %v4740_v35  ;;  %1855 = vst.msk [vmem:[%s5998_s8 + $0x90] sm:$0xff] %vm1572_vm3, %v1831_v60  ;;  %4512 = vmatprep.mubr.msk.f32.mxu1 %vm1572_vm3, %v1831_v60 }
 0x3dd   :  { %v5005_v57 = vpop.eup %5004  ;;  %v4744_v51 = vpack.c.bf16 %v4908_v52, %v4907_v3 }
 0x3de   :  { %v1833_v25 = vmul.f32 %v5005_v57, %v5698_v47 }
 0x3df   :  { %4513 = vmatmul.mubr.msk.f32.vlgmr.msra.gmra.mrb[28].mxu1 %vm1572_vm3, %v1832_v31  ;;  %4745 = vmatprep.subr.bf16.mxu0 %v4744_v51 }
 0x3e0   :  { %4747 = vmatpush3.bf16.msra.mxu0 %v4744_v51  ;;  %1857 = vst.msk [vmem:[%s5998_s8 + $0xa0] sm:$0xff] %vm1572_vm3, %v1833_v25  ;;  %4519 = vmatprep.mubr.msk.f32.mxu0 %vm1572_vm3, %v1833_v25 }
 0x3e1   :  { %4529 = vmatprep.subr.mxu0 %v4131_v36 }
 0x3e3   :  { %4520 = vmatmul.mubr.msk.f32.vlgmr.msra.gmra.mrb[20].mxu0 %vm1572_vm3, %v1834_v49  ;;  %v5937_v49 = vld [vmem:[%s5996_s6] sm:$0xf] }
 0x3e4   :  { %4530 = vmatpush3.msra.mxu0 %v4131_v36  ;;  %v3852_v5 = vrot.slane %v5937_v49, %v3851_v39 }
 0x3e5   :  { %4534 = vmatprep.subr.mxu0 %v2834_v2 }
 0x3fb   :  { %v1788_v47 = vpop.xlane.xlu0 %1787 }
 0x3fc   :  { %5006 = vrcp.f32 %v1788_v47 }
 0x406   :  { %v5007_v42 = vpop.eup %5006 }
 0x407   :  { %v1836_v55 = vmul.f32 %v5007_v42, %v5722_v56  ;;  %v3897_v42 = vld [vmem:[%s5995_s5] sm:$0xff] }
 0x409   :  { %1860 = vst.msk [vmem:[%s5998_s8 + $0xb8] sm:$0xff] %vm1572_vm3, %v1836_v55 }
 0x40b   :  { %v1785_v58 = vpop.xlane.xlu1 %1784 }
 0x40c   :  { %5008 = vrcp.f32 %v1785_v58 }
 0x40f   :  { %v4911_v44 = vpop.permute.xlu1 %4910 }
 0x410   :  { %v4913_v59 = vunpack.i.h.bf16 %v4911_v44  ;;  %v4912_v63 = vunpack.i.l.bf16 %v4911_v44  ;;  %v3899_v44 = vld [vmem:[%s5995_s5 + $0x10] sm:$0xff] }
 0x412   :  { %v4748_v0 = vpack.c.bf16 %v4913_v59, %v4912_v63  ;;  %v3900_v59 = vld [vmem:[%s5995_s5 + $0x18] sm:$0xff] }
 0x413   :  { %v4756_v63 = vpack.c.bf16 %v3900_v59, %v3899_v44 }
 0x414   :  { %4749 = vmatprep.subr.bf16.mxu1 %v4748_v0 }
 0x415   :  { %4751 = vmatpush3.bf16.msra.mxu1 %v4748_v0  ;;  %v3901_v0 = vld [vmem:[%s5995_s5 + $0x20] sm:$0xff] }
 0x416   :  { %v5009_v7 = vpop.eup %5008 }
 0x417   :  { %v1835_v34 = vmul.f32 %v5009_v7, %v5728_v11  ;;  %v4451_v1 = vpop.f32.mrb[18].mxu1  ;;  %v4139_v11 = vld [vmem:[%s5994_s4 + $0x18] sm:$0xff]  ;;  %v3902_v7 = vld [vmem:[%s5995_s5 + $0x28] sm:$0xff] }
 0x418   :  { %v1933_v17 = vpop.f32.mrb[19].mxu1 }
 0x419   :  { %1859 = vst.msk [vmem:[%s5998_s8 + $0xb0] sm:$0xff] %vm1572_vm3, %v1835_v34  ;;  %4526 = vmatprep.mubr.msk.f32.mxu1 %vm1572_vm3, %v1835_v34  ;;  %v4760_v34 = vpack.c.bf16 %v3902_v7, %v3901_v0 }
 0x41a   :  { %4527 = vmatmul.mubr.msk.f32.vlgmr.msra.gmra.mrb[30].mxu1 %vm1572_vm3, %v1836_v55  ;;  %v3898_v55 = vld [vmem:[%s5995_s5 + $0x8] sm:$0xff] }
 0x41b   :  { %v4752_v58 = vpack.c.bf16 %v3898_v55, %v3897_v42 }
 0x41d   :  { %4753 = vmatprep.subr.bf16.mxu1 %v4752_v58 }
 0x41e   :  { %4755 = vmatpush3.bf16.msra.mxu1 %v4752_v58 }
 0x41f   :  { %4757 = vmatprep.subr.bf16.mxu1 %v4756_v63 }
 0x422   :  { %4759 = vmatpush3.bf16.msra.mxu1 %v4756_v63 }
 0x423   :  { %4761 = vmatprep.subr.bf16.mxu1 %v4760_v34 }
 0x426   :  { %4763 = vmatpush3.bf16.msra.mxu1 %v4760_v34 }
 0x45b   :  { %v4458_v56 = vpop.f32.mrb[20].mxu1 }
 0x45c   :  { %v2014_v19 = vpop.f32.mrb[21].mxu1 }
 0x45d   :  { %4531 = vmatprep.mubr.msk.f32.mxu0 %vm478_vm1, %v2014_v19 }
 0x45e   :  { %4532 = vmatmul.mubr.msk.f32.vlgmr.msra.gmra.mrb[22].mxu0 %vm478_vm1, %v4458_v56 }
 0x45f   :  { %4536 = vmatprep.mubr.msk.f32.mxu0 %vm478_vm1, %v1933_v17  ;;  %4535 = vmatpush3.msra.mxu0 %v2834_v2  ;;  %v3904_v17 = vld [vmem:[%s5995_s5 + $0x38] sm:$0xff] }
 0x460   :  { %4539 = vmatprep.subr.mxu0 %v4136_v41 }
 0x466   :  { %4537 = vmatmul.mubr.msk.f32.vlgmr.msra.gmra.mrb[22].mxu0 %vm478_vm1, %v4451_v1  ;;  %v3903_v1 = vld [vmem:[%s5995_s5 + $0x30] sm:$0xff]  ;;  %s5049_s5 = smov [#allocation2]  }
 0x467   :  { %4540 = vmatpush3.msra.mxu0 %v4136_v41  ;;  %v4764_v56 = vpack.c.bf16 %v3904_v17, %v3903_v1  ;;  %s3997_s23 = sshll.u32 %s5049_s5, 4  ;;  %s3998_s23 = int_to_ptr.vmem [resolvable:$true] %s3997_s23 }
 0x468   :  { %4544 = vmatprep.subr.mxu0 %v4139_v11  ;;  %s5014_s26 = scalar_lea.vmem %s3998_s23, 256  ;;  %p5019_p1 = scmp.lt.s32.totalorder %s3998_s23, %s3998_s23 }
 0x469   :  { %4765 = vmatprep.subr.bf16.mxu1 %v4764_v56  ;;  %p5015_p0 = scmp.ne.s32.totalorder %s3998_s23, %s5014_s26  ;;  %p5020_p2 = scmp.lt.s32.totalorder %s5014_s26, %s5014_s26 }
 0x46a   :  { %4767 = vmatpush3.bf16.msra.mxu1 %v4764_v56 }
 0x46b   :  { %p5021_p3 = por %p5020_p2, %p5019_p1 }
 0x46d   :  { %p5022_p4 = pnand %p5021_p3, %p5015_p0 }
 0x489   :  { %v4465_v48 = vpop.f32.mrb[12].mxu0 }
 0x48a   :  { %v2095_v33 = vpop.f32.mrb[13].mxu0 }
 0x48b   :  { %4541 = vmatprep.mubr.msk.f32.mxu0 %vm478_vm1, %v2095_v33 }
 0x48c   :  { %4542 = vmatmul.mubr.msk.f32.vlgmr.msra.gmra.mrb[22].mxu0 %vm478_vm1, %v4465_v48 }
 0x48d   :  { %4545 = vmatpush3.msra.mxu0 %v4139_v11 }
 0x48e   :  { %4549 = vmatprep.subr.mxu0 %v4142_v10 }
 0x494   :  { %v4472_v13 = vpop.f32.mrb[22].mxu1 }
 0x495   :  { %v2176_v28 = vpop.f32.mrb[23].mxu1 }
 0x496   :  { %4546 = vmatprep.mubr.msk.f32.mxu0 %vm478_vm1, %v2176_v28  ;;  %v3891_v28 = vsub.s32 2, %v5931_v21 }
 0x497   :  { %4547 = vmatmul.mubr.msk.f32.vlgmr.msra.gmra.mrb[22].mxu0 %vm478_vm1, %v4472_v13  ;;  %v3885_v13 = vsub.s32 1, %v5931_v21 }
 0x498   :  { %v4479_v18 = vpop.f32.mrb[14].mxu0  ;;  %4550 = vmatpush3.msra.mxu0 %v4142_v10 }
 0x499   :  { %v2257_v9 = vpop.f32.mrb[15].mxu0  ;;  %4554 = vmatprep.subr.mxu0 %v4145_v6 }
 0x49a   :  { %4551 = vmatprep.mubr.msk.f32.mxu0 %vm478_vm1, %v2257_v9 }
 0x49b   :  { %v4486_v46 = vpop.f32.mrb[24].mxu1 }
 0x49c   :  { %v2338_v61 = vpop.f32.mrb[25].mxu1 }
 0x49f   :  { %4552 = vmatmul.mubr.msk.f32.vlgmr.msra.gmra.mrb[22].mxu0 %vm478_vm1, %v4479_v18 }
 0x4a0   :  { %4556 = vmatprep.mubr.msk.f32.mxu0 %vm478_vm1, %v2338_v61  ;;  %4555 = vmatpush3.msra.mxu0 %v4145_v6  ;;  %v3886_v6 = vrot.slane %v5937_v49, %v3885_v13 }
 0x4a1   :  { %4559 = vmatprep.subr.mxu0 %v4148_v53 }
 0x4a4   :  { %v4493_v62 = vpop.f32.mrb[16].mxu0 }
 0x4a5   :  { %v2419_v12 = vpop.f32.mrb[17].mxu0 }
 0x4a7   :  { %4557 = vmatmul.mubr.msk.f32.vlgmr.msra.gmra.mrb[22].mxu0 %vm478_vm1, %v4486_v46  ;;  %v3892_v46 = vrot.slane %v5937_v49, %v3891_v28 }
 0x4a8   :  { %v4500_v23 = vpop.f32.mrb[26].mxu1  ;;  %4561 = vmatprep.mubr.msk.f32.mxu0 %vm478_vm1, %v2419_v12  ;;  %4560 = vmatpush3.msra.mxu0 %v4148_v53 }
 0x4a9   :  { %v2500_v40 = vpop.f32.mrb[27].mxu1  ;;  %4564 = vmatprep.subr.mxu0 %v4151_v37 }
 0x4ac   :  { %v4507_v27 = vpop.f32.mrb[18].mxu0 }
 0x4ad   :  { %v2581_v30 = vpop.f32.mrb[19].mxu0 }
 0x4af   :  { %4562 = vmatmul.mubr.msk.f32.vlgmr.msra.gmra.mrb[22].mxu0 %vm478_vm1, %v4493_v62 }
 0x4b0   :  { %4566 = vmatprep.mubr.msk.f32.mxu0 %vm478_vm1, %v2500_v40  ;;  %4565 = vmatpush3.msra.mxu0 %v4151_v37 }
 0x4b1   :  { %4569 = vmatprep.subr.mxu0 %v4154_v20 }
 0x4b2   :  { %v4514_v24 = vpop.f32.mrb[28].mxu1 }
 0x4b3   :  { %v2662_v45 = vpop.f32.mrb[29].mxu1 }
 0x4b6   :  { %v4521_v26 = vpop.f32.mrb[20].mxu0 }
 0x4b7   :  { %v2743_v43 = vpop.f32.mrb[21].mxu0  ;;  %4567 = vmatmul.mubr.msk.f32.vlgmr.msra.gmra.mrb[22].mxu0 %vm478_vm1, %v4500_v23 }
 0x4b8   :  { %4571 = vmatprep.mubr.msk.f32.mxu0 %vm478_vm1, %v2581_v30  ;;  %4570 = vmatpush3.msra.mxu0 %v4154_v20  ;;  %v3907_v30 = vsub.s32 3, %v5931_v21 }
 0x4b9   :  { %4574 = vmatprep.subr.mxu0 %v4157_v4 }
 0x4ba   :  { %v3908_v20 = vrot.slane %v5937_v49, %v3907_v30 }
 0x4bf   :  { %4572 = vmatmul.mubr.msk.f32.vlgmr.msra.gmra.mrb[22].mxu0 %vm478_vm1, %v4507_v27 }
 0x4c0   :  { %4576 = vmatprep.mubr.msk.f32.mxu0 %vm478_vm1, %v2662_v45  ;;  %4575 = vmatpush3.msra.mxu0 %v4157_v4 }
 0x4c1   :  { %4579 = vmatprep.subr.mxu0 %v4160_v29 }
 0x4c7   :  { %4577 = vmatmul.mubr.msk.f32.vlgmr.msra.gmra.mrb[22].mxu0 %vm478_vm1, %v4514_v24 }
 0x4c8   :  { %4581 = vmatprep.mubr.msk.f32.mxu0 %vm478_vm1, %v2743_v43  ;;  %4580 = vmatpush3.msra.mxu0 %v4160_v29 }
 0x4c9   :  { %4584 = vmatprep.subr.mxu0 %v4163_v38 }
 0x4cf   :  { %4582 = vmatmul.mubr.msk.f32.vlgmr.msra.gmra.mrb[22].mxu0 %vm478_vm1, %v4521_v26 }
 0x4d0   :  { %4585 = vmatpush3.msra.mxu0 %v4163_v38 }
 0x4ed   :  { %v4528_v31 = vpop.f32.mrb[30].mxu1 }
 0x4ee   :  { %v2824_v16 = vpop.f32.mrb[31].mxu1 }
 0x4ef   :  { %4586 = vmatprep.mubr.msk.f32.mxu0 %vm478_vm1, %v2824_v16 }
 0x4f0   :  { %4587 = vmatmul.mubr.msk.f32.vlgmr.msra.gmra.mrb[22].mxu0 %vm478_vm1, %v4528_v31 }
 0x5c3   :  { %v4588_v22 = vpop.f32.mrb[22].mxu0 }
 0x5c4   :  { %v3854_v14 = vadd.f32 %v4588_v22, %v3852_v5  ;;  %v3838_v32 = vpop.f32.mrb[23].mxu0 }
 0x5c5   :  { %v3853_v54 = vadd.f32 %v3852_v5, %v3838_v32 }
 0x5c6   :  { %v3859_v8 = vsel %vm3855_vm4, %v3854_v14, 0.0 }
 0x5c7   :  { %3860 = vadd.xlane.f32.xlu0 %v3859_v8  ;;  %v3856_v35 = vsel %vm3855_vm4, %v3853_v54, 0.0 }
 0x5c8   :  { %3857 = vadd.xlane.f32.xlu1 %v3856_v35 }
 0x654   :  { %v3861_v15 = vpop.xlane.xlu0 %3860 }
 0x655   :  { %v3864_v60 = vmul.f32 0.015625, %v3861_v15  ;;  %v3858_v52 = vpop.xlane.xlu1 %3857 }
 0x656   :  { %v3863_v3 = vmul.f32 0.015625, %v3858_v52 }
 0x657   :  { %v3866_v57 = vsub.f32 %v3854_v14, %v3864_v60 }
 0x658   :  { %v3865_v51 = vsub.f32 %v3853_v54, %v3863_v3 }
 0x659   :  { %v3868_v2 = vmul.f32 %v3866_v57, %v3866_v57 }
 0x65a   :  { %v3867_v25 = vmul.f32 %v3865_v51, %v3865_v51 }
 0x65b   :  { %v3872_v47 = vsel %vm3855_vm4, %v3868_v2, 0.0 }
 0x65c   :  { %v3869_v36 = vsel %vm3855_vm4, %v3867_v25, 0.0 }
 0x65d   :  { %3870 = vadd.xlane.f32.xlu0 %v3869_v36 }
 0x661   :  { %3873 = vadd.xlane.f32.xlu0 %v3872_v47 }
 0x6ea   :  { %v3871_v19 = vpop.xlane.xlu0 %3870 }
 0x6eb   :  { %v3875_v41 = vmul.f32 0.015625, %v3871_v19 }
 0x6ed   :  { %v3877_v11 = vadd.f32 1e-05, %v3875_v41 }
 0x6ee   :  { %v3874_v48 = vpop.xlane.xlu0 %3873 }
 0x6ef   :  { %5010 = vrsqrt.f32 %v3877_v11  ;;  %v3876_v33 = vmul.f32 0.015625, %v3874_v48 }
 0x6f1   :  { %v3878_v10 = vadd.f32 1e-05, %v3876_v33 }
 0x6f3   :  { %5012 = vrsqrt.f32 %v3878_v10 }
 0x6f9   :  { %v5011_v18 = vpop.eup %5010 }
 0x6fa   :  { %v3881_v9 = vmul.f32 %v5011_v18, %v3865_v51 }
 0x6fc   :  { %v3887_v61 = vmul.f32 %v3886_v6, %v3881_v9 }
 0x6fd   :  { %v5013_v53 = vpop.eup %5012 }
 0x6fe   :  { %v3882_v62 = vmul.f32 %v5013_v53, %v3866_v57  ;;  %v3893_v12 = vadd.f32 %v3892_v46, %v3887_v61 }
 0x700   :  { %v3888_v37 = vmul.f32 %v3886_v6, %v3882_v62  ;;  %v3895_v23 = vmax.f32 %v3893_v12, 0.0 }
 0x702   :  { %v3894_v40 = vadd.f32 %v3892_v46, %v3888_v37  ;;  %4605 = vmatprep.mubr.msk.f32.mxu1 %vm3855_vm4, %v3895_v23 }
 0x704   :  { %v3896_v27 = vmax.f32 %v3894_v40, 0.0 }
 0x706   :  { %4606 = vmatmul.mubr.msk.f32.vlgmr.msra.gmra.mrb[32].mxu1 %vm3855_vm4, %v3896_v27 }
 0x7d9   :  { %v4607_v24 = vpop.f32.mrb[32].mxu1 }
 0x7da   :  { %v3987_v45 = vadd.f32 %v4607_v24, %v3908_v20  ;;  %v3981_v26 = vpop.f32.mrb[33].mxu1 }
 0x7db   :  { %v3982_v4 = vadd.f32 %v3981_v26, %v3908_v20 }
 0x7dc   :  { %3991 = vst.msk [vmem:[#allocation2 + $0x8] sm:$0xff] %vm42_vm0, %v3987_v45 }
 0x7dd   :  { %3990 = vst.msk [vmem:[#allocation2] sm:$0xff] %vm42_vm0, %v3982_v4 }
 0x7de   :  { %5025 = shalt.err (!%p5022_p4)
}
 0x7df   :  { %s5026_s17 = scalar_lea.hbm %s5997_s7, 256 }
 0x7e0   :  { %p5027_p5 = scmp.ne.s32.totalorder %s5997_s7, %s5026_s17  ;;  %p5030_p6 = scmp.lt.u32.totalorder %s5026_s17, %s5997_s7 }
 0x7e2   :  { %p5032_p7 = pnand %p5030_p6, %p5027_p5 }
 0x7e4   :  { %5035 = shalt.err (!%p5032_p7)
}
 0x7e5   :  { %s5050_s21 = smov 128   ;;  %s5051_s0 = smov 8  }
 0x7e6   :  { %4003 = dma.vmem_to_hbm [thread:$0]  %s3998_s23, 256, %s5997_s7, [#allocation3], %s5050_s21, %s5050_s21, %s5051_s0  }
 0x7e7   :  { %5036 = dma.done.wait [#allocation3], 256  }
 0x7e8   :  { %5037 = vsyncadd [#allocation3], 4294967040 }
 0x7e9   :  { %4011 = vsyncpa [#allocation3], 1 }

</bundles_post_ra>
